<compile_context>
chip_gen: v7x
topology: tpu7x:2x2x1
jax: 0.10.0
libtpu: 0.0.40
codegen_flags: <defaults>
</compile_context>

<pallas_src>
import functools

import jax
import jax.numpy as jnp
from jax.experimental import pallas as pl
from jax.experimental.pallas import tpu as pltpu

EPS = 1e-5


def _layernorm(x, gamma, beta):
    # f32 statistics (keeps v5e EUP/VPU on the fast f32 path).
    mu = jnp.mean(x, axis=-1, keepdims=True)
    var = jnp.mean((x - mu) ** 2, axis=-1, keepdims=True)
    return (x - mu) * jax.lax.rsqrt(var + EPS) * gamma + beta


# --------------------------- fused encoder kernel ----------------------------

def encoder_kernel(x_in_ref, pos_ref,
                   ln1_g_ref, ln1_b_ref,
                   wq_ref, bq_ref, wk_ref, bk_ref, wv_ref, bv_ref,
                   wo_ref, bo_ref,
                   ln2_g_ref, ln2_b_ref, w1_ref, b1_ref, w2_ref, b2_ref,
                   lnf_g_ref, lnf_b_ref,
                   o_ref,
                   x_scr, q_scr, k_scr, v_scr, ctx_scr,
                   *, num_heads):
    layer = pl.program_id(1)
    n_layers = pl.num_programs(1)

    # Prologue (fused positional-embedding add) — only on the first layer step.
    @pl.when(layer == 0)
    def _():
        x_scr[...] = x_in_ref[0] + pos_ref[...]

    x = x_scr[...]                                   # (L, D) f32, VMEM-resident carry
    L, D = x.shape
    hd = D // num_heads
    scale = hd ** -0.5

    # ---------------- self-attention sub-block (pre-LN) ----------------
    h = _layernorm(x, ln1_g_ref[0], ln1_b_ref[0])
    hb = h.astype(jnp.bfloat16)

    q = (jnp.dot(hb, wq_ref[0], preferred_element_type=jnp.float32)
         + bq_ref[0]) * scale
    k = jnp.dot(hb, wk_ref[0], preferred_element_type=jnp.float32) + bk_ref[0]
    v = jnp.dot(hb, wv_ref[0], preferred_element_type=jnp.float32) + bv_ref[0]

    # Scatter heads into head-major VMEM scratch (static slices; no concat).
    for hh in range(num_heads):
        sl = slice(hh * hd, (hh + 1) * hd)
        q_scr[hh] = q[:, sl].astype(jnp.bfloat16)
        k_scr[hh] = k[:, sl].astype(jnp.bfloat16)
        v_scr[hh] = v[:, sl].astype(jnp.bfloat16)

    # Batched-head attention: one einsum over all heads.
    s = jnp.einsum('hqd,hkd->hqk', q_scr[...], k_scr[...],
                   preferred_element_type=jnp.float32)      # (H, L, L) f32

    # Causal mask (PyTorch fill(finfo.min).triu_(1) semantics) applied in place.
    row = jax.lax.broadcasted_iota(jnp.int32, (L, L), 0)
    col = jax.lax.broadcasted_iota(jnp.int32, (L, L), 1)
    s = jnp.where((col > row)[None, :, :], jnp.finfo(jnp.float32).min, s)

    # Softmax in f32; divide via EUP reciprocal.
    s = s - jnp.max(s, axis=-1, keepdims=True)
    p = jnp.exp(s)
    p = p * pl.reciprocal(jnp.sum(p, axis=-1, keepdims=True), approx=True)

    ctx3 = jnp.einsum('hqk,hkd->hqd', p.astype(jnp.bfloat16), v_scr[...],
                      preferred_element_type=jnp.float32)   # (H, L, hd) f32

    # Re-assemble (L, D) context directly into VMEM scratch slices (no concat),
    # then a single full-width output projection.
    for hh in range(num_heads):
        ctx_scr[:, hh * hd:(hh + 1) * hd] = ctx3[hh].astype(jnp.bfloat16)

    attn_out = jnp.dot(ctx_scr[...], wo_ref[0],
                       preferred_element_type=jnp.float32) + bo_ref[0]
    x = x + attn_out                                 # residual (f32)

    # ---------------- MLP sub-block (pre-LN, quick_gelu) ----------------
    h = _layernorm(x, ln2_g_ref[0], ln2_b_ref[0])
    h1 = jnp.dot(h.astype(jnp.bfloat16), w1_ref[0],
                 preferred_element_type=jnp.float32) + b1_ref[0]
    h1 = h1 * jax.nn.sigmoid(1.702 * h1)             # CLIP quick_gelu in f32
    h2 = jnp.dot(h1.astype(jnp.bfloat16), w2_ref[0],
                 preferred_element_type=jnp.float32) + b2_ref[0]
    x = x + h2                                       # residual (f32)

    x_scr[...] = x                                   # carry to next layer step

    # Epilogue (fused final LayerNorm) — only on the last layer step.
    @pl.when(layer == n_layers - 1)
    def _():
        o_ref[0] = _layernorm(x, lnf_g_ref[...], lnf_b_ref[...])


# --------------------------- pallas_call glue --------------------------------

_LAYER_PARAM_NAMES = ("ln1_g", "ln1_b", "wq", "bq", "wk", "bk", "wv", "bv",
                      "wo", "bo", "ln2_g", "ln2_b", "w1", "b1", "w2", "b2")


def _run_encoder(params, prompts):
    B, L, D = prompts.shape
    H = params["num_heads"]
    hd = D // H
    NL = params["wq"].shape[0]

    def x_spec():
        return pl.BlockSpec((1, L, D), lambda b, l: (b, 0, 0))

    def layer_spec(p):                    # stacked (NL, r, c) -> one layer per step
        shp = p.shape
        return pl.BlockSpec((1,) + shp[1:], lambda b, l: (l,) + (0,) * (len(shp) - 1))

    def const_spec(p):                    # whole array, fetched once
        shp = p.shape
        nd = len(shp)
        return pl.BlockSpec(shp, lambda b, l: (0,) * nd)

    layer_params = [params[n] for n in _LAYER_PARAM_NAMES]

    in_specs = ([x_spec(), const_spec(params["pos_emb"])]
                + [layer_spec(p) for p in layer_params]
                + [const_spec(params["lnf_g"]), const_spec(params["lnf_b"])])

    kernel = functools.partial(encoder_kernel, num_heads=H)

    return pl.pallas_call(
        kernel,
        out_shape=jax.ShapeDtypeStruct((B, L, D), jnp.float32),
        grid=(B, NL),
        in_specs=in_specs,
        out_specs=x_spec(),
        scratch_shapes=[
            pltpu.VMEM((L, D), jnp.float32),        # carried hidden state
            pltpu.VMEM((H, L, hd), jnp.bfloat16),   # q heads
            pltpu.VMEM((H, L, hd), jnp.bfloat16),   # k heads
            pltpu.VMEM((H, L, hd), jnp.bfloat16),   # v heads
            pltpu.VMEM((L, D), jnp.bfloat16),       # attention context
        ],
        compiler_params=pltpu.CompilerParams(
            dimension_semantics=("parallel", "arbitrary")),
    )(prompts, params["pos_emb"], *layer_params,
      params["lnf_g"], params["lnf_b"])


def custom_text_encoder(params, prompts, pooled=False, tokenized_prompts=None):
    prompts = prompts.astype(jnp.float32)
    prompts_dim = prompts.ndim
    n_prompts = 1
    b0 = prompts.shape[0]
    if prompts_dim == 4:                             # 'b p l d -> (b p) l d'
        b0, n_prompts, L_, D_ = prompts.shape
        prompts = prompts.reshape(b0 * n_prompts, L_, D_)
        if tokenized_prompts is not None:            # 'b l -> (b p) l'
            tokenized_prompts = jnp.repeat(tokenized_prompts, n_prompts, axis=0)

    # fused: pos-emb add + all encoder layers + final LayerNorm
    x = _run_encoder(params, prompts)

    pooled_out = None
    if pooled:
        assert tokenized_prompts is not None
        # TODO(synk): EOS-token gather (prompts[arange, argmax]) kept as plain
        # JAX glue — tiny data-dependent gather, not a compute hot path.
        eos_idx = jnp.argmax(tokenized_prompts, axis=-1)
        pooled_out = x[jnp.arange(x.shape[0]), eos_idx]

    if prompts_dim == 4:                             # '(b p) l d -> b p l d'
        x = x.reshape(b0, n_prompts, x.shape[1], x.shape[2])
        if pooled_out is not None:
            pooled_out = pooled_out.reshape(b0, n_prompts, -1)

    if pooled:
        return x, pooled_out
    return x


# --------------------------- deterministic params ----------------------------

def init_params(key, L, D, H, FF, num_layers):
    def nrm(k, shape, scale=0.02):
        return scale * jax.random.normal(k, shape, jnp.float32)

    ks = jax.random.split(key, 8)
    NL = num_layers
    params = dict(
        pos_emb=nrm(ks[0], (L, D)),
        # LayerNorm params / biases in f32; matmul weights stored in bf16
        # (f32 accumulation inside the kernel).
        ln1_g=jnp.ones((NL, 1, D), jnp.float32),
        ln1_b=jnp.zeros((NL, 1, D), jnp.float32),
        wq=nrm(ks[1], (NL, D, D)).astype(jnp.bfloat16),
        bq=jnp.zeros((NL, 1, D), jnp.float32),
        wk=nrm(ks[2], (NL, D, D)).astype(jnp.bfloat16),
        bk=jnp.zeros((NL, 1, D), jnp.float32),
        wv=nrm(ks[3], (NL, D, D)).astype(jnp.bfloat16),
        bv=jnp.zeros((NL, 1, D), jnp.float32),
        wo=nrm(ks[4], (NL, D, D)).astype(jnp.bfloat16),
        bo=jnp.zeros((NL, 1, D), jnp.float32),
        ln2_g=jnp.ones((NL, 1, D), jnp.float32),
        ln2_b=jnp.zeros((NL, 1, D), jnp.float32),
        w1=nrm(ks[5], (NL, D, FF)).astype(jnp.bfloat16),
        b1=jnp.zeros((NL, 1, FF), jnp.float32),
        w2=nrm(ks[6], (NL, FF, D)).astype(jnp.bfloat16),
        b2=jnp.zeros((NL, 1, D), jnp.float32),
        lnf_g=jnp.ones((1, D), jnp.float32),
        lnf_b=jnp.zeros((1, D), jnp.float32),
        num_heads=H,
    )
    return params


# --------------------------- main --------------------------------------------

if __name__ == "__main__":
    B, L, D, H, FF, NL = 2, 8, 32, 2, 64, 2
    key = jax.random.PRNGKey(0)
    k_param, k_prompt, k_tok = jax.random.split(key, 3)

    params = init_params(k_param, L, D, H, FF, NL)
    prompts = jax.random.normal(k_prompt, (B, L, D), jnp.float32)
    tokenized = jax.random.randint(k_tok, (B, L), 0, 1000, dtype=jnp.int32)

    out, pooled_out = custom_text_encoder(
        params, prompts, pooled=True, tokenized_prompts=tokenized)
    jax.block_until_ready((out, pooled_out))

    assert out.shape == (B, L, D), out.shape
    assert pooled_out.shape == (B, D), pooled_out.shape
    assert jnp.all(jnp.isfinite(out)) and jnp.all(jnp.isfinite(pooled_out))
    print("KERNEL_OK")
</pallas_src>

<mosaic_0001>
module attributes {stable_mosaic.version = 11 : i64} {
  func.func @encoder_kernel(%arg0: i32, %arg1: i32, %arg2: memref<1x8x32xf32, #tpu.memory_space<vmem>>, %arg3: memref<8x32xf32, #tpu.memory_space<vmem>>, %arg4: memref<1x1x32xf32, #tpu.memory_space<vmem>>, %arg5: memref<1x1x32xf32, #tpu.memory_space<vmem>>, %arg6: memref<1x32x32xbf16, #tpu.memory_space<vmem>>, %arg7: memref<1x1x32xf32, #tpu.memory_space<vmem>>, %arg8: memref<1x32x32xbf16, #tpu.memory_space<vmem>>, %arg9: memref<1x1x32xf32, #tpu.memory_space<vmem>>, %arg10: memref<1x32x32xbf16, #tpu.memory_space<vmem>>, %arg11: memref<1x1x32xf32, #tpu.memory_space<vmem>>, %arg12: memref<1x32x32xbf16, #tpu.memory_space<vmem>>, %arg13: memref<1x1x32xf32, #tpu.memory_space<vmem>>, %arg14: memref<1x1x32xf32, #tpu.memory_space<vmem>>, %arg15: memref<1x1x32xf32, #tpu.memory_space<vmem>>, %arg16: memref<1x32x64xbf16, #tpu.memory_space<vmem>>, %arg17: memref<1x1x64xf32, #tpu.memory_space<vmem>>, %arg18: memref<1x64x32xbf16, #tpu.memory_space<vmem>>, %arg19: memref<1x1x32xf32, #tpu.memory_space<vmem>>, %arg20: memref<1x32xf32, #tpu.memory_space<vmem>>, %arg21: memref<1x32xf32, #tpu.memory_space<vmem>>, %arg22: memref<1x8x32xf32, #tpu.memory_space<vmem>>, %arg23: memref<8x32xf32, #tpu.memory_space<vmem>>, %arg24: memref<2x8x16xbf16, #tpu.memory_space<vmem>>, %arg25: memref<2x8x16xbf16, #tpu.memory_space<vmem>>, %arg26: memref<2x8x16xbf16, #tpu.memory_space<vmem>>, %arg27: memref<8x32xbf16, #tpu.memory_space<vmem>>) attributes {dimension_semantics = [#tpu.dimension_semantics<parallel>, #tpu.dimension_semantics<arbitrary>], iteration_bounds = array<i64: 2, 2>, scalar_prefetch = 0 : i64, scratch_operands = 5 : i64, tpu.core_type = #tpu.core_type<tc>, window_params = [{transform_indices = @transform_0, window_bounds = array<i64: 1, 8, 32>}, {pipeline_mode = #tpu.pipeline_mode<synchronous>, transform_indices = @transform_1, window_bounds = array<i64: 8, 32>}, {transform_indices = @transform_2, window_bounds = array<i64: 1, 1, 32>}, {transform_indices = @transform_3, window_bounds = array<i64: 1, 1, 32>}, {transform_indices = @transform_4, window_bounds = array<i64: 1, 32, 32>}, {transform_indices = @transform_5, window_bounds = array<i64: 1, 1, 32>}, {transform_indices = @transform_6, window_bounds = array<i64: 1, 32, 32>}, {transform_indices = @transform_7, window_bounds = array<i64: 1, 1, 32>}, {transform_indices = @transform_8, window_bounds = array<i64: 1, 32, 32>}, {transform_indices = @transform_9, window_bounds = array<i64: 1, 1, 32>}, {transform_indices = @transform_10, window_bounds = array<i64: 1, 32, 32>}, {transform_indices = @transform_11, window_bounds = array<i64: 1, 1, 32>}, {transform_indices = @transform_12, window_bounds = array<i64: 1, 1, 32>}, {transform_indices = @transform_13, window_bounds = array<i64: 1, 1, 32>}, {transform_indices = @transform_14, window_bounds = array<i64: 1, 32, 64>}, {transform_indices = @transform_15, window_bounds = array<i64: 1, 1, 64>}, {transform_indices = @transform_16, window_bounds = array<i64: 1, 64, 32>}, {transform_indices = @transform_17, window_bounds = array<i64: 1, 1, 32>}, {pipeline_mode = #tpu.pipeline_mode<synchronous>, transform_indices = @transform_18, window_bounds = array<i64: 1, 32>}, {pipeline_mode = #tpu.pipeline_mode<synchronous>, transform_indices = @transform_19, window_bounds = array<i64: 1, 32>}, {transform_indices = @transform_20, window_bounds = array<i64: 1, 8, 32>}]} {
    %c0_i32 = arith.constant 0 : i32
    %0 = arith.cmpi eq, %arg1, %c0_i32 : i32
    %1 = arith.extui %0 : i1 to i32
    %c0_i32_0 = arith.constant 0 : i32
    %2 = arith.cmpi ne, %1, %c0_i32_0 : i32
    scf.if %2 {
      %c0_107 = arith.constant 0 : index
      %c0_108 = arith.constant 0 : index
      %c0_109 = arith.constant 0 : index
      %180 = vector.load %arg2[%c0_107, %c0_108, %c0_109] : memref<1x8x32xf32, #tpu.memory_space<vmem>>, vector<1x8x32xf32>
      %181 = vector.shape_cast %180 : vector<1x8x32xf32> to vector<8x32xf32>
      %c0_110 = arith.constant 0 : index
      %c0_111 = arith.constant 0 : index
      %182 = vector.load %arg3[%c0_110, %c0_111] : memref<8x32xf32, #tpu.memory_space<vmem>>, vector<8x32xf32>
      %183 = arith.addf %181, %182 : vector<8x32xf32>
      %c0_112 = arith.constant 0 : index
      %c0_113 = arith.constant 0 : index
      %184 = vector.load %arg23[%c0_112, %c0_113] : memref<8x32xf32, #tpu.memory_space<vmem>>, vector<8x32xf32>
      tpu.vector_store %arg23[%c0_112, %c0_113], %183 {strides = array<i32>} : memref<8x32xf32, #tpu.memory_space<vmem>>, vector<8x32xf32>,
    } else {
    }
    %c0 = arith.constant 0 : index
    %c0_1 = arith.constant 0 : index
    %3 = vector.load %arg23[%c0, %c0_1] : memref<8x32xf32, #tpu.memory_space<vmem>>, vector<8x32xf32>
    %c0_2 = arith.constant 0 : index
    %c0_3 = arith.constant 0 : index
    %c0_4 = arith.constant 0 : index
    %4 = vector.load %arg4[%c0_2, %c0_3, %c0_4] : memref<1x1x32xf32, #tpu.memory_space<vmem>>, vector<1x1x32xf32>
    %5 = vector.shape_cast %4 : vector<1x1x32xf32> to vector<1x32xf32>
    %c0_5 = arith.constant 0 : index
    %c0_6 = arith.constant 0 : index
    %c0_7 = arith.constant 0 : index
    %6 = vector.load %arg5[%c0_5, %c0_6, %c0_7] : memref<1x1x32xf32, #tpu.memory_space<vmem>>, vector<1x1x32xf32>
    %7 = vector.shape_cast %6 : vector<1x1x32xf32> to vector<1x32xf32>
    %cst = arith.constant dense<0.000000e+00> : vector<8xf32>
    %8 = vector.multi_reduction <add>, %3, %cst [1] : vector<8x32xf32> to vector<8xf32>
    %9 = vector.shape_cast %8 : vector<8xf32> to vector<8x1xf32>
    %cst_8 = arith.constant 3.200000e+01 : f32
    %10 = vector.broadcast %cst_8 : f32 to vector<8x1xf32>
    %11 = arith.divf %9, %10 : vector<8x1xf32>
    %12 = vector.broadcast %11 : vector<8x1xf32> to vector<8x32xf32>
    %13 = arith.subf %3, %12 : vector<8x32xf32>
    %14 = arith.mulf %13, %13 : vector<8x32xf32>
    %cst_9 = arith.constant dense<0.000000e+00> : vector<8xf32>
    %15 = vector.multi_reduction <add>, %14, %cst_9 [1] : vector<8x32xf32> to vector<8xf32>
    %16 = vector.shape_cast %15 : vector<8xf32> to vector<8x1xf32>
    %cst_10 = arith.constant 3.200000e+01 : f32
    %17 = vector.broadcast %cst_10 : f32 to vector<8x1xf32>
    %18 = arith.divf %16, %17 : vector<8x1xf32>
    %19 = vector.broadcast %11 : vector<8x1xf32> to vector<8x32xf32>
    %20 = arith.subf %3, %19 : vector<8x32xf32>
    %cst_11 = arith.constant 9.99999974E-6 : f32
    %21 = vector.broadcast %cst_11 : f32 to vector<8x1xf32>
    %22 = arith.addf %18, %21 : vector<8x1xf32>
    %23 = math.rsqrt %22 : vector<8x1xf32>
    %24 = vector.broadcast %23 : vector<8x1xf32> to vector<8x32xf32>
    %25 = arith.mulf %20, %24 : vector<8x32xf32>
    %26 = vector.broadcast %5 : vector<1x32xf32> to vector<8x32xf32>
    %27 = arith.mulf %25, %26 : vector<8x32xf32>
    %28 = vector.broadcast %7 : vector<1x32xf32> to vector<8x32xf32>
    %29 = arith.addf %27, %28 : vector<8x32xf32>
    %30 = arith.truncf %29 : vector<8x32xf32> to vector<8x32xbf16>
    %c0_12 = arith.constant 0 : index
    %c0_13 = arith.constant 0 : index
    %c0_14 = arith.constant 0 : index
    %31 = vector.load %arg6[%c0_12, %c0_13, %c0_14] : memref<1x32x32xbf16, #tpu.memory_space<vmem>>, vector<1x32x32xbf16>
    %32 = vector.shape_cast %31 : vector<1x32x32xbf16> to vector<32x32xbf16>
    %cst_15 = arith.constant dense<0.000000e+00> : vector<8x32xf32>
    %33 = tpu.matmul %30, %32, %cst_15 {dimension_numbers = #tpu.dot_dimension_numbers<[1], [0], [0], [1], [0, 0, 1, 1], [], []>} : vector<8x32xbf16>, vector<32x32xbf16>, vector<8x32xf32> -> vector<8x32xf32>
    %c0_16 = arith.constant 0 : index
    %c0_17 = arith.constant 0 : index
    %c0_18 = arith.constant 0 : index
    %34 = vector.load %arg7[%c0_16, %c0_17, %c0_18] : memref<1x1x32xf32, #tpu.memory_space<vmem>>, vector<1x1x32xf32>
    %35 = vector.shape_cast %34 : vector<1x1x32xf32> to vector<1x32xf32>
    %36 = vector.broadcast %35 : vector<1x32xf32> to vector<8x32xf32>
    %37 = arith.addf %33, %36 : vector<8x32xf32>
    %cst_19 = arith.constant 2.500000e-01 : f32
    %38 = vector.broadcast %cst_19 : f32 to vector<8x32xf32>
    %39 = arith.mulf %37, %38 : vector<8x32xf32>
    %c0_20 = arith.constant 0 : index
    %c0_21 = arith.constant 0 : index
    %c0_22 = arith.constant 0 : index
    %40 = vector.load %arg8[%c0_20, %c0_21, %c0_22] : memref<1x32x32xbf16, #tpu.memory_space<vmem>>, vector<1x32x32xbf16>
    %41 = vector.shape_cast %40 : vector<1x32x32xbf16> to vector<32x32xbf16>
    %cst_23 = arith.constant dense<0.000000e+00> : vector<8x32xf32>
    %42 = tpu.matmul %30, %41, %cst_23 {dimension_numbers = #tpu.dot_dimension_numbers<[1], [0], [0], [1], [0, 0, 1, 1], [], []>} : vector<8x32xbf16>, vector<32x32xbf16>, vector<8x32xf32> -> vector<8x32xf32>
    %c0_24 = arith.constant 0 : index
    %c0_25 = arith.constant 0 : index
    %c0_26 = arith.constant 0 : index
    %43 = vector.load %arg9[%c0_24, %c0_25, %c0_26] : memref<1x1x32xf32, #tpu.memory_space<vmem>>, vector<1x1x32xf32>
    %44 = vector.shape_cast %43 : vector<1x1x32xf32> to vector<1x32xf32>
    %45 = vector.broadcast %44 : vector<1x32xf32> to vector<8x32xf32>
    %46 = arith.addf %42, %45 : vector<8x32xf32>
    %c0_27 = arith.constant 0 : index
    %c0_28 = arith.constant 0 : index
    %c0_29 = arith.constant 0 : index
    %47 = vector.load %arg10[%c0_27, %c0_28, %c0_29] : memref<1x32x32xbf16, #tpu.memory_space<vmem>>, vector<1x32x32xbf16>
    %48 = vector.shape_cast %47 : vector<1x32x32xbf16> to vector<32x32xbf16>
    %cst_30 = arith.constant dense<0.000000e+00> : vector<8x32xf32>
    %49 = tpu.matmul %30, %48, %cst_30 {dimension_numbers = #tpu.dot_dimension_numbers<[1], [0], [0], [1], [0, 0, 1, 1], [], []>} : vector<8x32xbf16>, vector<32x32xbf16>, vector<8x32xf32> -> vector<8x32xf32>
    %c0_31 = arith.constant 0 : index
    %c0_32 = arith.constant 0 : index
    %c0_33 = arith.constant 0 : index
    %50 = vector.load %arg11[%c0_31, %c0_32, %c0_33] : memref<1x1x32xf32, #tpu.memory_space<vmem>>, vector<1x1x32xf32>
    %51 = vector.shape_cast %50 : vector<1x1x32xf32> to vector<1x32xf32>
    %52 = vector.broadcast %51 : vector<1x32xf32> to vector<8x32xf32>
    %53 = arith.addf %49, %52 : vector<8x32xf32>
    %54 = vector.extract_strided_slice %39 {offsets = [0, 0], sizes = [8, 16], strides = [1, 1]} : vector<8x32xf32> to vector<8x16xf32>
    %55 = arith.truncf %54 : vector<8x16xf32> to vector<8x16xbf16>
    %c0_34 = arith.constant 0 : index
    %c0_35 = arith.constant 0 : index
    %c0_36 = arith.constant 0 : index
    %56 = vector.load %arg24[%c0_34, %c0_35, %c0_36] : memref<2x8x16xbf16, #tpu.memory_space<vmem>>, vector<1x8x16xbf16>
    %57 = vector.shape_cast %56 : vector<1x8x16xbf16> to vector<8x16xbf16>
    %58 = vector.shape_cast %55 : vector<8x16xbf16> to vector<1x8x16xbf16>
    tpu.vector_store %arg24[%c0_34, %c0_35, %c0_36], %58 {strides = array<i32>} : memref<2x8x16xbf16, #tpu.memory_space<vmem>>, vector<1x8x16xbf16>,
    %59 = vector.extract_strided_slice %46 {offsets = [0, 0], sizes = [8, 16], strides = [1, 1]} : vector<8x32xf32> to vector<8x16xf32>
    %60 = arith.truncf %59 : vector<8x16xf32> to vector<8x16xbf16>
    %c0_37 = arith.constant 0 : index
    %c0_38 = arith.constant 0 : index
    %c0_39 = arith.constant 0 : index
    %61 = vector.load %arg25[%c0_37, %c0_38, %c0_39] : memref<2x8x16xbf16, #tpu.memory_space<vmem>>, vector<1x8x16xbf16>
    %62 = vector.shape_cast %61 : vector<1x8x16xbf16> to vector<8x16xbf16>
    %63 = vector.shape_cast %60 : vector<8x16xbf16> to vector<1x8x16xbf16>
    tpu.vector_store %arg25[%c0_37, %c0_38, %c0_39], %63 {strides = array<i32>} : memref<2x8x16xbf16, #tpu.memory_space<vmem>>, vector<1x8x16xbf16>,
    %64 = vector.extract_strided_slice %53 {offsets = [0, 0], sizes = [8, 16], strides = [1, 1]} : vector<8x32xf32> to vector<8x16xf32>
    %65 = arith.truncf %64 : vector<8x16xf32> to vector<8x16xbf16>
    %c0_40 = arith.constant 0 : index
    %c0_41 = arith.constant 0 : index
    %c0_42 = arith.constant 0 : index
    %66 = vector.load %arg26[%c0_40, %c0_41, %c0_42] : memref<2x8x16xbf16, #tpu.memory_space<vmem>>, vector<1x8x16xbf16>
    %67 = vector.shape_cast %66 : vector<1x8x16xbf16> to vector<8x16xbf16>
    %68 = vector.shape_cast %65 : vector<8x16xbf16> to vector<1x8x16xbf16>
    tpu.vector_store %arg26[%c0_40, %c0_41, %c0_42], %68 {strides = array<i32>} : memref<2x8x16xbf16, #tpu.memory_space<vmem>>, vector<1x8x16xbf16>,
    %69 = vector.extract_strided_slice %39 {offsets = [0, 16], sizes = [8, 16], strides = [1, 1]} : vector<8x32xf32> to vector<8x16xf32>
    %70 = arith.truncf %69 : vector<8x16xf32> to vector<8x16xbf16>
    %c1 = arith.constant 1 : index
    %c0_43 = arith.constant 0 : index
    %c0_44 = arith.constant 0 : index
    %71 = vector.load %arg24[%c1, %c0_43, %c0_44] : memref<2x8x16xbf16, #tpu.memory_space<vmem>>, vector<1x8x16xbf16>
    %72 = vector.shape_cast %71 : vector<1x8x16xbf16> to vector<8x16xbf16>
    %73 = vector.shape_cast %70 : vector<8x16xbf16> to vector<1x8x16xbf16>
    tpu.vector_store %arg24[%c1, %c0_43, %c0_44], %73 {strides = array<i32>} : memref<2x8x16xbf16, #tpu.memory_space<vmem>>, vector<1x8x16xbf16>,
    %74 = vector.extract_strided_slice %46 {offsets = [0, 16], sizes = [8, 16], strides = [1, 1]} : vector<8x32xf32> to vector<8x16xf32>
    %75 = arith.truncf %74 : vector<8x16xf32> to vector<8x16xbf16>
    %c1_45 = arith.constant 1 : index
    %c0_46 = arith.constant 0 : index
    %c0_47 = arith.constant 0 : index
    %76 = vector.load %arg25[%c1_45, %c0_46, %c0_47] : memref<2x8x16xbf16, #tpu.memory_space<vmem>>, vector<1x8x16xbf16>
    %77 = vector.shape_cast %76 : vector<1x8x16xbf16> to vector<8x16xbf16>
    %78 = vector.shape_cast %75 : vector<8x16xbf16> to vector<1x8x16xbf16>
    tpu.vector_store %arg25[%c1_45, %c0_46, %c0_47], %78 {strides = array<i32>} : memref<2x8x16xbf16, #tpu.memory_space<vmem>>, vector<1x8x16xbf16>,
    %79 = vector.extract_strided_slice %53 {offsets = [0, 16], sizes = [8, 16], strides = [1, 1]} : vector<8x32xf32> to vector<8x16xf32>
    %80 = arith.truncf %79 : vector<8x16xf32> to vector<8x16xbf16>
    %c1_48 = arith.constant 1 : index
    %c0_49 = arith.constant 0 : index
    %c0_50 = arith.constant 0 : index
    %81 = vector.load %arg26[%c1_48, %c0_49, %c0_50] : memref<2x8x16xbf16, #tpu.memory_space<vmem>>, vector<1x8x16xbf16>
    %82 = vector.shape_cast %81 : vector<1x8x16xbf16> to vector<8x16xbf16>
    %83 = vector.shape_cast %80 : vector<8x16xbf16> to vector<1x8x16xbf16>
    tpu.vector_store %arg26[%c1_48, %c0_49, %c0_50], %83 {strides = array<i32>} : memref<2x8x16xbf16, #tpu.memory_space<vmem>>, vector<1x8x16xbf16>,
    %c0_51 = arith.constant 0 : index
    %c0_52 = arith.constant 0 : index
    %c0_53 = arith.constant 0 : index
    %84 = vector.load %arg24[%c0_51, %c0_52, %c0_53] : memref<2x8x16xbf16, #tpu.memory_space<vmem>>, vector<2x8x16xbf16>
    %c0_54 = arith.constant 0 : index
    %c0_55 = arith.constant 0 : index
    %c0_56 = arith.constant 0 : index
    %85 = vector.load %arg25[%c0_54, %c0_55, %c0_56] : memref<2x8x16xbf16, #tpu.memory_space<vmem>>, vector<2x8x16xbf16>
    "tpu.trace_start"() <{level = 10 : i32, message = "hqd,hkd->hqk"}> : () -> ()
    %cst_57 = arith.constant dense<0.000000e+00> : vector<2x8x8xf32>
    %86 = tpu.matmul %84, %85, %cst_57 {dimension_numbers = #tpu.dot_dimension_numbers<[2], [2], [1], [1], [0, 0, 0, 1, 1, 1], [0], [0]>} : vector<2x8x16xbf16>, vector<2x8x16xbf16>, vector<2x8x8xf32> -> vector<2x8x8xf32>
    "tpu.trace_stop"() : () -> ()
    %87 = tpu.iota {dimensions = array<i32: 0>} : vector<8x8xi32>
    %88 = tpu.iota {dimensions = array<i32: 1>} : vector<8x8xi32>
    %89 = arith.cmpi sgt, %88, %87 : vector<8x8xi32>
    %90 = vector.shape_cast %89 : vector<8x8xi1> to vector<1x8x8xi1>
    %cst_58 = arith.constant -3.40282347E+38 : f32
    %91 = vector.shape_cast %90 : vector<1x8x8xi1> to vector<1x8x8xi1>
    %92 = vector.broadcast %91 : vector<1x8x8xi1> to vector<2x8x8xi1>
    %93 = vector.broadcast %cst_58 : f32 to vector<2x8x8xf32>
    %94 = arith.select %92, %93, %86 : vector<2x8x8xi1>, vector<2x8x8xf32>
    %cst_59 = arith.constant dense<0xFF800000> : vector<2x8xf32>
    %95 = vector.multi_reduction <maximumf>, %94, %cst_59 [2] : vector<2x8x8xf32> to vector<2x8xf32>
    %96 = vector.shape_cast %95 : vector<2x8xf32> to vector<2x8x1xf32>
    %97 = vector.broadcast %96 : vector<2x8x1xf32> to vector<2x8x8xf32>
    %98 = arith.subf %94, %97 : vector<2x8x8xf32>
    %99 = math.exp %98 : vector<2x8x8xf32>
    %cst_60 = arith.constant dense<0.000000e+00> : vector<2x8xf32>
    %100 = vector.multi_reduction <add>, %99, %cst_60 [2] : vector<2x8x8xf32> to vector<2x8xf32>
    %101 = vector.shape_cast %100 : vector<2x8xf32> to vector<2x8x1xf32>
    %102 = tpu.reciprocal %101 {approx = true} : vector<2x8x1xf32> -> vector<2x8x1xf32>
    %103 = vector.broadcast %102 : vector<2x8x1xf32> to vector<2x8x8xf32>
    %104 = arith.mulf %99, %103 : vector<2x8x8xf32>
    %105 = arith.truncf %104 : vector<2x8x8xf32> to vector<2x8x8xbf16>
    %c0_61 = arith.constant 0 : index
    %c0_62 = arith.constant 0 : index
    %c0_63 = arith.constant 0 : index
    %106 = vector.load %arg26[%c0_61, %c0_62, %c0_63] : memref<2x8x16xbf16, #tpu.memory_space<vmem>>, vector<2x8x16xbf16>
    "tpu.trace_start"() <{level = 10 : i32, message = "hqk,hkd->hqd"}> : () -> ()
    %cst_64 = arith.constant dense<0.000000e+00> : vector<2x8x16xf32>
    %107 = tpu.matmul %105, %106, %cst_64 {dimension_numbers = #tpu.dot_dimension_numbers<[2], [1], [1], [2], [0, 0, 0, 1, 1, 2], [0], [0]>} : vector<2x8x8xbf16>, vector<2x8x16xbf16>, vector<2x8x16xf32> -> vector<2x8x16xf32>
    "tpu.trace_stop"() : () -> ()
    %108 = vector.extract_strided_slice %107 {offsets = [0, 0, 0], sizes = [1, 8, 16], strides = [1, 1, 1]} : vector<2x8x16xf32> to vector<1x8x16xf32>
    %109 = vector.shape_cast %108 : vector<1x8x16xf32> to vector<8x16xf32>
    %110 = arith.truncf %109 : vector<8x16xf32> to vector<8x16xbf16>
    %c0_65 = arith.constant 0 : index
    %c0_66 = arith.constant 0 : index
    %111 = vector.load %arg27[%c0_65, %c0_66] : memref<8x32xbf16, #tpu.memory_space<vmem>>, vector<8x16xbf16>
    tpu.vector_store %arg27[%c0_65, %c0_66], %110 {strides = array<i32>} : memref<8x32xbf16, #tpu.memory_space<vmem>>, vector<8x16xbf16>,
    %112 = vector.extract_strided_slice %107 {offsets = [1, 0, 0], sizes = [1, 8, 16], strides = [1, 1, 1]} : vector<2x8x16xf32> to vector<1x8x16xf32>
    %113 = vector.shape_cast %112 : vector<1x8x16xf32> to vector<8x16xf32>
    %114 = arith.truncf %113 : vector<8x16xf32> to vector<8x16xbf16>
    %c0_67 = arith.constant 0 : index
    %c16 = arith.constant 16 : index
    %115 = vector.load %arg27[%c0_67, %c16] : memref<8x32xbf16, #tpu.memory_space<vmem>>, vector<8x16xbf16>
    tpu.vector_store %arg27[%c0_67, %c16], %114 {strides = array<i32>} : memref<8x32xbf16, #tpu.memory_space<vmem>>, vector<8x16xbf16>,
    %c0_68 = arith.constant 0 : index
    %c0_69 = arith.constant 0 : index
    %116 = vector.load %arg27[%c0_68, %c0_69] : memref<8x32xbf16, #tpu.memory_space<vmem>>, vector<8x32xbf16>
    %c0_70 = arith.constant 0 : index
    %c0_71 = arith.constant 0 : index
    %c0_72 = arith.constant 0 : index
    %117 = vector.load %arg12[%c0_70, %c0_71, %c0_72] : memref<1x32x32xbf16, #tpu.memory_space<vmem>>, vector<1x32x32xbf16>
    %118 = vector.shape_cast %117 : vector<1x32x32xbf16> to vector<32x32xbf16>
    %cst_73 = arith.constant dense<0.000000e+00> : vector<8x32xf32>
    %119 = tpu.matmul %116, %118, %cst_73 {dimension_numbers = #tpu.dot_dimension_numbers<[1], [0], [0], [1], [0, 0, 1, 1], [], []>} : vector<8x32xbf16>, vector<32x32xbf16>, vector<8x32xf32> -> vector<8x32xf32>
    %c0_74 = arith.constant 0 : index
    %c0_75 = arith.constant 0 : index
    %c0_76 = arith.constant 0 : index
    %120 = vector.load %arg13[%c0_74, %c0_75, %c0_76] : memref<1x1x32xf32, #tpu.memory_space<vmem>>, vector<1x1x32xf32>
    %121 = vector.shape_cast %120 : vector<1x1x32xf32> to vector<1x32xf32>
    %122 = vector.broadcast %121 : vector<1x32xf32> to vector<8x32xf32>
    %123 = arith.addf %119, %122 : vector<8x32xf32>
    %124 = arith.addf %3, %123 : vector<8x32xf32>
    %c0_77 = arith.constant 0 : index
    %c0_78 = arith.constant 0 : index
    %c0_79 = arith.constant 0 : index
    %125 = vector.load %arg14[%c0_77, %c0_78, %c0_79] : memref<1x1x32xf32, #tpu.memory_space<vmem>>, vector<1x1x32xf32>
    %126 = vector.shape_cast %125 : vector<1x1x32xf32> to vector<1x32xf32>
    %c0_80 = arith.constant 0 : index
    %c0_81 = arith.constant 0 : index
    %c0_82 = arith.constant 0 : index
    %127 = vector.load %arg15[%c0_80, %c0_81, %c0_82] : memref<1x1x32xf32, #tpu.memory_space<vmem>>, vector<1x1x32xf32>
    %128 = vector.shape_cast %127 : vector<1x1x32xf32> to vector<1x32xf32>
    %cst_83 = arith.constant dense<0.000000e+00> : vector<8xf32>
    %129 = vector.multi_reduction <add>, %124, %cst_83 [1] : vector<8x32xf32> to vector<8xf32>
    %130 = vector.shape_cast %129 : vector<8xf32> to vector<8x1xf32>
    %cst_84 = arith.constant 3.200000e+01 : f32
    %131 = vector.broadcast %cst_84 : f32 to vector<8x1xf32>
    %132 = arith.divf %130, %131 : vector<8x1xf32>
    %133 = vector.broadcast %132 : vector<8x1xf32> to vector<8x32xf32>
    %134 = arith.subf %124, %133 : vector<8x32xf32>
    %135 = arith.mulf %134, %134 : vector<8x32xf32>
    %cst_85 = arith.constant dense<0.000000e+00> : vector<8xf32>
    %136 = vector.multi_reduction <add>, %135, %cst_85 [1] : vector<8x32xf32> to vector<8xf32>
    %137 = vector.shape_cast %136 : vector<8xf32> to vector<8x1xf32>
    %cst_86 = arith.constant 3.200000e+01 : f32
    %138 = vector.broadcast %cst_86 : f32 to vector<8x1xf32>
    %139 = arith.divf %137, %138 : vector<8x1xf32>
    %140 = vector.broadcast %132 : vector<8x1xf32> to vector<8x32xf32>
    %141 = arith.subf %124, %140 : vector<8x32xf32>
    %cst_87 = arith.constant 9.99999974E-6 : f32
    %142 = vector.broadcast %cst_87 : f32 to vector<8x1xf32>
    %143 = arith.addf %139, %142 : vector<8x1xf32>
    %144 = math.rsqrt %143 : vector<8x1xf32>
    %145 = vector.broadcast %144 : vector<8x1xf32> to vector<8x32xf32>
    %146 = arith.mulf %141, %145 : vector<8x32xf32>
    %147 = vector.broadcast %126 : vector<1x32xf32> to vector<8x32xf32>
    %148 = arith.mulf %146, %147 : vector<8x32xf32>
    %149 = vector.broadcast %128 : vector<1x32xf32> to vector<8x32xf32>
    %150 = arith.addf %148, %149 : vector<8x32xf32>
    %151 = arith.truncf %150 : vector<8x32xf32> to vector<8x32xbf16>
    %c0_88 = arith.constant 0 : index
    %c0_89 = arith.constant 0 : index
    %c0_90 = arith.constant 0 : index
    %152 = vector.load %arg16[%c0_88, %c0_89, %c0_90] : memref<1x32x64xbf16, #tpu.memory_space<vmem>>, vector<1x32x64xbf16>
    %153 = vector.shape_cast %152 : vector<1x32x64xbf16> to vector<32x64xbf16>
    %cst_91 = arith.constant dense<0.000000e+00> : vector<8x64xf32>
    %154 = tpu.matmul %151, %153, %cst_91 {dimension_numbers = #tpu.dot_dimension_numbers<[1], [0], [0], [1], [0, 0, 1, 1], [], []>} : vector<8x32xbf16>, vector<32x64xbf16>, vector<8x64xf32> -> vector<8x64xf32>
    %c0_92 = arith.constant 0 : index
    %c0_93 = arith.constant 0 : index
    %c0_94 = arith.constant 0 : index
    %155 = vector.load %arg17[%c0_92, %c0_93, %c0_94] : memref<1x1x64xf32, #tpu.memory_space<vmem>>, vector<1x1x64xf32>
    %156 = vector.shape_cast %155 : vector<1x1x64xf32> to vector<1x64xf32>
    %157 = vector.broadcast %156 : vector<1x64xf32> to vector<8x64xf32>
    %158 = arith.addf %154, %157 : vector<8x64xf32>
    %cst_95 = arith.constant 1.702000e+00 : f32
    %159 = vector.broadcast %cst_95 : f32 to vector<8x64xf32>
    %160 = arith.mulf %159, %158 : vector<8x64xf32>
    %161 = arith.negf %160 : vector<8x64xf32>
    %162 = math.exp %161 : vector<8x64xf32>
    %cst_96 = arith.constant 1.000000e+00 : f32
    %163 = vector.broadcast %cst_96 : f32 to vector<8x64xf32>
    %164 = arith.addf %163, %162 : vector<8x64xf32>
    %165 = arith.divf %163, %164 : vector<8x64xf32>
    %166 = arith.mulf %158, %165 : vector<8x64xf32>
    %167 = arith.truncf %166 : vector<8x64xf32> to vector<8x64xbf16>
    %c0_97 = arith.constant 0 : index
    %c0_98 = arith.constant 0 : index
    %c0_99 = arith.constant 0 : index
    %168 = vector.load %arg18[%c0_97, %c0_98, %c0_99] : memref<1x64x32xbf16, #tpu.memory_space<vmem>>, vector<1x64x32xbf16>
    %169 = vector.shape_cast %168 : vector<1x64x32xbf16> to vector<64x32xbf16>
    %cst_100 = arith.constant dense<0.000000e+00> : vector<8x32xf32>
    %170 = tpu.matmul %167, %169, %cst_100 {dimension_numbers = #tpu.dot_dimension_numbers<[1], [0], [0], [1], [0, 0, 1, 1], [], []>} : vector<8x64xbf16>, vector<64x32xbf16>, vector<8x32xf32> -> vector<8x32xf32>
    %c0_101 = arith.constant 0 : index
    %c0_102 = arith.constant 0 : index
    %c0_103 = arith.constant 0 : index
    %171 = vector.load %arg19[%c0_101, %c0_102, %c0_103] : memref<1x1x32xf32, #tpu.memory_space<vmem>>, vector<1x1x32xf32>
    %172 = vector.shape_cast %171 : vector<1x1x32xf32> to vector<1x32xf32>
    %173 = vector.broadcast %172 : vector<1x32xf32> to vector<8x32xf32>
    %174 = arith.addf %170, %173 : vector<8x32xf32>
    %175 = arith.addf %124, %174 : vector<8x32xf32>
    %c0_104 = arith.constant 0 : index
    %c0_105 = arith.constant 0 : index
    %176 = vector.load %arg23[%c0_104, %c0_105] : memref<8x32xf32, #tpu.memory_space<vmem>>, vector<8x32xf32>
    tpu.vector_store %arg23[%c0_104, %c0_105], %175 {strides = array<i32>} : memref<8x32xf32, #tpu.memory_space<vmem>>, vector<8x32xf32>,
    %c1_i32 = arith.constant 1 : i32
    %177 = arith.cmpi eq, %arg1, %c1_i32 : i32
    %178 = arith.extui %177 : i1 to i32
    %c0_i32_106 = arith.constant 0 : i32
    %179 = arith.cmpi ne, %178, %c0_i32_106 : i32
    scf.if %179 {
      %c0_107 = arith.constant 0 : index
      %c0_108 = arith.constant 0 : index
      %180 = vector.load %arg20[%c0_107, %c0_108] : memref<1x32xf32, #tpu.memory_space<vmem>>, vector<1x32xf32>
      %c0_109 = arith.constant 0 : index
      %c0_110 = arith.constant 0 : index
      %181 = vector.load %arg21[%c0_109, %c0_110] : memref<1x32xf32, #tpu.memory_space<vmem>>, vector<1x32xf32>
      %cst_111 = arith.constant dense<0.000000e+00> : vector<8xf32>
      %182 = vector.multi_reduction <add>, %175, %cst_111 [1] : vector<8x32xf32> to vector<8xf32>
      %183 = vector.shape_cast %182 : vector<8xf32> to vector<8x1xf32>
      %cst_112 = arith.constant 3.200000e+01 : f32
      %184 = vector.broadcast %cst_112 : f32 to vector<8x1xf32>
      %185 = arith.divf %183, %184 : vector<8x1xf32>
      %186 = vector.broadcast %185 : vector<8x1xf32> to vector<8x32xf32>
      %187 = arith.subf %175, %186 : vector<8x32xf32>
      %188 = arith.mulf %187, %187 : vector<8x32xf32>
      %cst_113 = arith.constant dense<0.000000e+00> : vector<8xf32>
      %189 = vector.multi_reduction <add>, %188, %cst_113 [1] : vector<8x32xf32> to vector<8xf32>
      %190 = vector.shape_cast %189 : vector<8xf32> to vector<8x1xf32>
      %cst_114 = arith.constant 3.200000e+01 : f32
      %191 = vector.broadcast %cst_114 : f32 to vector<8x1xf32>
      %192 = arith.divf %190, %191 : vector<8x1xf32>
      %193 = vector.broadcast %185 : vector<8x1xf32> to vector<8x32xf32>
      %194 = arith.subf %175, %193 : vector<8x32xf32>
      %cst_115 = arith.constant 9.99999974E-6 : f32
      %195 = vector.broadcast %cst_115 : f32 to vector<8x1xf32>
      %196 = arith.addf %192, %195 : vector<8x1xf32>
      %197 = math.rsqrt %196 : vector<8x1xf32>
      %198 = vector.broadcast %197 : vector<8x1xf32> to vector<8x32xf32>
      %199 = arith.mulf %194, %198 : vector<8x32xf32>
      %200 = vector.broadcast %180 : vector<1x32xf32> to vector<8x32xf32>
      %201 = arith.mulf %199, %200 : vector<8x32xf32>
      %202 = vector.broadcast %181 : vector<1x32xf32> to vector<8x32xf32>
      %203 = arith.addf %201, %202 : vector<8x32xf32>
      %c0_116 = arith.constant 0 : index
      %c0_117 = arith.constant 0 : index
      %c0_118 = arith.constant 0 : index
      %204 = vector.load %arg22[%c0_116, %c0_117, %c0_118] : memref<1x8x32xf32, #tpu.memory_space<vmem>>, vector<1x8x32xf32>
      %205 = vector.shape_cast %204 : vector<1x8x32xf32> to vector<8x32xf32>
      %206 = vector.shape_cast %203 : vector<8x32xf32> to vector<1x8x32xf32>
      tpu.vector_store %arg22[%c0_116, %c0_117, %c0_118], %206 {strides = array<i32>} : memref<1x8x32xf32, #tpu.memory_space<vmem>>, vector<1x8x32xf32>,
    } else {
    }
    return
  }
  func.func @transform_0(%arg0: i32, %arg1: i32) -> (i32, i32, i32) {
    %c0_i32 = arith.constant 0 : i32
    %c0_i32_0 = arith.constant 0 : i32
    %c0_i32_1 = arith.constant 0 : i32
    return %arg0, %c0_i32, %c0_i32_0 : i32, i32, i32
  }
  func.func @transform_1(%arg0: i32, %arg1: i32) -> (i32, i32) {
    %c0_i32 = arith.constant 0 : i32
    %c0_i32_0 = arith.constant 0 : i32
    %c0_i32_1 = arith.constant 0 : i32
    return %c0_i32, %c0_i32_0 : i32, i32
  }
  func.func @transform_2(%arg0: i32, %arg1: i32) -> (i32, i32, i32) {
    %c0_i32 = arith.constant 0 : i32
    %c0_i32_0 = arith.constant 0 : i32
    %c0_i32_1 = arith.constant 0 : i32
    return %arg1, %c0_i32, %c0_i32_0 : i32, i32, i32
  }
  func.func @transform_3(%arg0: i32, %arg1: i32) -> (i32, i32, i32) {
    %c0_i32 = arith.constant 0 : i32
    %c0_i32_0 = arith.constant 0 : i32
    %c0_i32_1 = arith.constant 0 : i32
    return %arg1, %c0_i32, %c0_i32_0 : i32, i32, i32
  }
  func.func @transform_4(%arg0: i32, %arg1: i32) -> (i32, i32, i32) {
    %c0_i32 = arith.constant 0 : i32
    %c0_i32_0 = arith.constant 0 : i32
    %c0_i32_1 = arith.constant 0 : i32
    return %arg1, %c0_i32, %c0_i32_0 : i32, i32, i32
  }
  func.func @transform_5(%arg0: i32, %arg1: i32) -> (i32, i32, i32) {
    %c0_i32 = arith.constant 0 : i32
    %c0_i32_0 = arith.constant 0 : i32
    %c0_i32_1 = arith.constant 0 : i32
    return %arg1, %c0_i32, %c0_i32_0 : i32, i32, i32
  }
  func.func @transform_6(%arg0: i32, %arg1: i32) -> (i32, i32, i32) {
    %c0_i32 = arith.constant 0 : i32
    %c0_i32_0 = arith.constant 0 : i32
    %c0_i32_1 = arith.constant 0 : i32
    return %arg1, %c0_i32, %c0_i32_0 : i32, i32, i32
  }
  func.func @transform_7(%arg0: i32, %arg1: i32) -> (i32, i32, i32) {
    %c0_i32 = arith.constant 0 : i32
    %c0_i32_0 = arith.constant 0 : i32
    %c0_i32_1 = arith.constant 0 : i32
    return %arg1, %c0_i32, %c0_i32_0 : i32, i32, i32
  }
  func.func @transform_8(%arg0: i32, %arg1: i32) -> (i32, i32, i32) {
    %c0_i32 = arith.constant 0 : i32
    %c0_i32_0 = arith.constant 0 : i32
    %c0_i32_1 = arith.constant 0 : i32
    return %arg1, %c0_i32, %c0_i32_0 : i32, i32, i32
  }
  func.func @transform_9(%arg0: i32, %arg1: i32) -> (i32, i32, i32) {
    %c0_i32 = arith.constant 0 : i32
    %c0_i32_0 = arith.constant 0 : i32
    %c0_i32_1 = arith.constant 0 : i32
    return %arg1, %c0_i32, %c0_i32_0 : i32, i32, i32
  }
  func.func @transform_10(%arg0: i32, %arg1: i32) -> (i32, i32, i32) {
    %c0_i32 = arith.constant 0 : i32
    %c0_i32_0 = arith.constant 0 : i32
    %c0_i32_1 = arith.constant 0 : i32
    return %arg1, %c0_i32, %c0_i32_0 : i32, i32, i32
  }
  func.func @transform_11(%arg0: i32, %arg1: i32) -> (i32, i32, i32) {
    %c0_i32 = arith.constant 0 : i32
    %c0_i32_0 = arith.constant 0 : i32
    %c0_i32_1 = arith.constant 0 : i32
    return %arg1, %c0_i32, %c0_i32_0 : i32, i32, i32
  }
  func.func @transform_12(%arg0: i32, %arg1: i32) -> (i32, i32, i32) {
    %c0_i32 = arith.constant 0 : i32
    %c0_i32_0 = arith.constant 0 : i32
    %c0_i32_1 = arith.constant 0 : i32
    return %arg1, %c0_i32, %c0_i32_0 : i32, i32, i32
  }
  func.func @transform_13(%arg0: i32, %arg1: i32) -> (i32, i32, i32) {
    %c0_i32 = arith.constant 0 : i32
    %c0_i32_0 = arith.constant 0 : i32
    %c0_i32_1 = arith.constant 0 : i32
    return %arg1, %c0_i32, %c0_i32_0 : i32, i32, i32
  }
  func.func @transform_14(%arg0: i32, %arg1: i32) -> (i32, i32, i32) {
    %c0_i32 = arith.constant 0 : i32
    %c0_i32_0 = arith.constant 0 : i32
    %c0_i32_1 = arith.constant 0 : i32
    return %arg1, %c0_i32, %c0_i32_0 : i32, i32, i32
  }
  func.func @transform_15(%arg0: i32, %arg1: i32) -> (i32, i32, i32) {
    %c0_i32 = arith.constant 0 : i32
    %c0_i32_0 = arith.constant 0 : i32
    %c0_i32_1 = arith.constant 0 : i32
    return %arg1, %c0_i32, %c0_i32_0 : i32, i32, i32
  }
  func.func @transform_16(%arg0: i32, %arg1: i32) -> (i32, i32, i32) {
    %c0_i32 = arith.constant 0 : i32
    %c0_i32_0 = arith.constant 0 : i32
    %c0_i32_1 = arith.constant 0 : i32
    return %arg1, %c0_i32, %c0_i32_0 : i32, i32, i32
  }
  func.func @transform_17(%arg0: i32, %arg1: i32) -> (i32, i32, i32) {
    %c0_i32 = arith.constant 0 : i32
    %c0_i32_0 = arith.constant 0 : i32
    %c0_i32_1 = arith.constant 0 : i32
    return %arg1, %c0_i32, %c0_i32_0 : i32, i32, i32
  }
  func.func @transform_18(%arg0: i32, %arg1: i32) -> (i32, i32) {
    %c0_i32 = arith.constant 0 : i32
    %c0_i32_0 = arith.constant 0 : i32
    %c0_i32_1 = arith.constant 0 : i32
    return %c0_i32, %c0_i32_0 : i32, i32
  }
  func.func @transform_19(%arg0: i32, %arg1: i32) -> (i32, i32) {
    %c0_i32 = arith.constant 0 : i32
    %c0_i32_0 = arith.constant 0 : i32
    %c0_i32_1 = arith.constant 0 : i32
    return %c0_i32, %c0_i32_0 : i32, i32
  }
  func.func @transform_20(%arg0: i32, %arg1: i32) -> (i32, i32, i32) {
    %c0_i32 = arith.constant 0 : i32
    %c0_i32_0 = arith.constant 0 : i32
    %c0_i32_1 = arith.constant 0 : i32
    return %arg0, %c0_i32, %c0_i32_0 : i32, i32, i32
  }
}

</mosaic_0001>

<bundles_post_ra>
// kernel: tpu_custom_call.1
= control target key start
LH: loop header
LB: loop body
LE: loop exit
PB: predicated region body
PF: predicated region fallthrough
CT: control target
= control target key end

     0   :  { %s3366_s0 = inlined_call_operand.hbm [shape: f32[2,8,32], index: 0, kind: input, shape index: {}]   ;;  %s3367_s1 = inlined_call_operand.hbm [shape: f32[8,32], index: 1, kind: input, shape index: {}]   ;;  %s3368_s2 = inlined_call_operand.vmem [shape: f32[2,1,32], index: 2, kind: input, shape index: {}]   ;;  %s3369_s3 = inlined_call_operand.vmem [shape: f32[2,1,32], index: 3, kind: input, shape index: {}]   ;;  %s3370_s4 = inlined_call_operand.vmem [shape: bf16[2,32,32], index: 4, kind: input, shape index: {}]   ;;  %s3371_s5 = inlined_call_operand.vmem [shape: f32[2,1,32], index: 5, kind: input, shape index: {}]   ;;  %s3372_s6 = inlined_call_operand.vmem [shape: bf16[2,32,32], index: 6, kind: input, shape index: {}]   ;;  %s3373_s7 = inlined_call_operand.vmem [shape: f32[2,1,32], index: 7, kind: input, shape index: {}]   ;;  %s3374_s8 = inlined_call_operand.vmem [shape: bf16[2,32,32], index: 8, kind: input, shape index: {}]   ;;  %s3375_s9 = inlined_call_operand.vmem [shape: f32[2,1,32], index: 9, kind: input, shape index: {}]   ;;  %s3376_s10 = inlined_call_operand.hbm [shape: bf16[2,32,32], index: 10, kind: input, shape index: {}]   ;;  %s3377_s11 = inlined_call_operand.vmem [shape: f32[2,1,32], index: 11, kind: input, shape index: {}]   ;;  %s3378_s12 = inlined_call_operand.vmem [shape: f32[2,1,32], index: 12, kind: input, shape index: {}]   ;;  %s3379_s13 = inlined_call_operand.vmem [shape: f32[2,1,32], index: 13, kind: input, shape index: {}]   ;;  %s3380_s14 = inlined_call_operand.hbm [shape: bf16[2,32,64], index: 14, kind: input, shape index: {}]   ;;  %s3381_s15 = inlined_call_operand.vmem [shape: f32[2,1,64], index: 15, kind: input, shape index: {}]   ;;  %s3382_s16 = inlined_call_operand.vmem [shape: bf16[2,64,32], index: 16, kind: input, shape index: {}]   ;;  %s3383_s17 = inlined_call_operand.vmem [shape: f32[2,1,32], index: 17, kind: input, shape index: {}]   ;;  %s3384_s18 = inlined_call_operand.vmem [shape: f32[1,32], index: 18, kind: input, shape index: {}]   ;;  %s3385_s19 = inlined_call_operand.vmem [shape: f32[1,32], index: 19, kind: input, shape index: {}]   ;;  %s3386_s20 = inlined_call_operand.hbm [shape: f32[2,8,32], index: 20, kind: output, shape index: {}]  }
   0x1   :  { %3416 = sst [smem:[#allocation34_spill]] %s3366_s0 }
   0x2   :  { %3417 = sst [smem:[#allocation35_spill]] %s3367_s1 }
   0x3   :  { %3418 = sst [smem:[#allocation36_spill]] %s3368_s2 }
   0x4   :  { %3419 = sst [smem:[#allocation37_spill]] %s3369_s3 }
   0x5   :  { %3420 = sst [smem:[#allocation38_spill]] %s3370_s4 }
   0x6   :  { %3421 = sst [smem:[#allocation39_spill]] %s3372_s6 }
   0x7   :  { %3422 = sst [smem:[#allocation40_spill]] %s3374_s8 }
   0x8   :  { %3423 = sst [smem:[#allocation41_spill]] %s3375_s9 }
   0x9   :  { %3424 = sst [smem:[#allocation42_spill]] %s3376_s10 }
   0xa   :  { %3425 = sst [smem:[#allocation43_spill]] %s3377_s11 }
   0xb   :  { %3426 = sst [smem:[#allocation44_spill]] %s3378_s12 }
   0xc   :  { %3427 = sst [smem:[#allocation45_spill]] %s3379_s13 }
   0xd   :  { %3428 = sst [smem:[#allocation46_spill]] %s3380_s14 }
   0xe   :  { %3429 = sst [smem:[#allocation47_spill]] %s3381_s15 }
   0xf   :  { %3430 = sst [smem:[#allocation48_spill]] %s3382_s16 }
  0x10   :  { %3431 = sst [smem:[#allocation49_spill]] %s3383_s17 }
  0x11   :  { %3432 = sst [smem:[#allocation50_spill]] %s3384_s18 }
  0x12   :  { %3433 = sst [smem:[#allocation51_spill]] %s3385_s19 }
  0x13   :  { %3434 = sst [smem:[#allocation52_spill]] %s3386_s20 }
  0x14   :  { %25 = vsyncpa [#allocation8], 0 }
  0x15   :  { %27 = vsyncpa [#allocation8 + $0x1], 0 }
  0x16   :  { %28 = vsyncpa [#allocation11], 0 }
  0x17   :  { %29 = vsyncpa [#allocation9], 0 }
  0x18   :  { %31 = vsyncpa [#allocation9 + $0x1], 0  ;;  %s2758_s1 = smov 0   ;;  %s2760_s22 = smov 0  }
  0x19   :  { %s2762_s23 = smov 0   ;;  %s2764_s24 = smov 0  }
  0x1a   :  { %s2766_s2 = smov 0   ;;  %s2768_s25 = smov 0  }
  0x1b   :  { %s2770_s3 = smov 0   ;;  %s2772_s26 = smov 0  }
  0x1c   :  { %s2774_s27 = smov 0   ;;  %s2776_s28 = smov 0  }
  0x1d   :  { %s2778_s4 = smov 0  }
  0x1e LB: > { %3435 = sst [smem:[#allocation19_spill]] %s2604_s22  ;;  %s46_s29 = sadd.s32 1, %s2632_s27  ;;  %s2640_s4 = sphi %s2778_s4, %s37_s4   ;;  %s2636_s28 = sphi %s2776_s28, %s3522_s28   ;;  %s2632_s27 = sphi %s2774_s27, %s3521_s27   ;;  %s2628_s26 = sphi %s2772_s26, %s3520_s26   ;;  %s2624_s3 = sphi %s2770_s3, %s3519_s3   ;;  %s2620_s25 = sphi %s2768_s25, %s3518_s25   ;;  %s2616_s2 = sphi %s2766_s2, %s3517_s2   ;;  %s2612_s24 = sphi %s2764_s24, %s3516_s24   ;;  %s2608_s23 = sphi %s2762_s23, %s3515_s23   ;;  %s2604_s22 = sphi %s2760_s22, %s3514_s22   ;;  %s2600_s1 = sphi %s2758_s1, %s3513_s1  }
  0x1f   : > { %3436 = sst [smem:[#allocation20_spill]] %s2608_s23  ;;  %s49_s30 = sadd.s32 1, %s2636_s28 }
  0x20   : > { %3437 = sst [smem:[#allocation21_spill]] %s2612_s24  ;;  %p47_p0 = scmp.ge.s32.totalorder %s46_s29, 2 }
  0x21   : > { %3438 = sst [smem:[#allocation22_spill]] %s2616_s2  ;;  %s56_s0 = sadd.s32 1, %s2620_s25 }
  0x22   : > { %3439 = sst [smem:[#allocation23_spill]] %s2620_s25  ;;  %p3392_p1 = scmp.ne.s32.totalorder %s2620_s25, %s2616_s2 }
  0x23   : > { %3440 = sst [smem:[#allocation24_spill]] %s2628_s26  ;;  %p64_p2 = scmp.eq.s32.totalorder %s2640_s4, 0 }
  0x24   : > { %3441 = sst [smem:[#allocation25_spill]] %s2632_s27  ;;  %s3524_s29 = smov (%p47_p0, %s46_s29), 0 }
  0x25   : > { %3442 = sst [smem:[#allocation26_spill]] %s2636_s28  ;;  %s3526_s30 = smov (!%p47_p0, %s49_s30), %s2636_s28 }
  0x26   : > { %3443 = sst [smem:[#allocation27_spill]] %s2640_s4  ;;  %p2825_p3 = por %p64_p2, %p3392_p1 }
  0x27   : > { %3444 = sst [smem:[#allocation28_spill]] %s3524_s29  ;;  %s308_s20 = ssub.s32 %s2632_s27, %s3524_s29 }
  0x28   : > { %p51_p4 = scmp.ge.s32.totalorder %s3526_s30, 2  ;;  %p309_p5 = scmp.eq.s32.totalorder %s308_s20, 0 }
  0x29   : > { %s311_s26 = sadd.s32 1, %s2608_s23  ;;  %p318_p6 = scmp.ne.s32.totalorder %s2608_s23, %s2604_s22 }
  0x2a   : > { %s3528_s30 = smov (%p51_p4, %s3526_s30), 0  ;;  %p2262_p9 = scmp.lt.s32.totalorder %s2640_s4, 4 }
  0x2b   : > { %3446 = sst [smem:[#allocation29_spill]] %s3528_s30  ;;  %s53_s18 = ssub.s32 %s2636_s28, %s3528_s30 }
  0x2c   : > { %s2837_s19 = scalar_select %p309_p5, %s2608_s23, %s311_s26  }
  0x2d   : > { %p2841_p7 = por %p318_p6, %p64_p2  ;;  %p54_p8 = scmp.eq.s32.totalorder %s53_s18, 0 }
  0x2e   : > { %3447 = sst [smem:[#allocation30_spill]] %s2837_s19  ;;  %s615_s29 = sand.u32 1, %s2640_s4  }
  0x2f   : > { %s2848_s16 = scalar_select %p54_p8, %s2620_s25, %s56_s0  }
  0x30   : > { %s617_s20 = sand.u32 1, %s2620_s25   ;;  %s2049_s13 = sshll.u32 %s2636_s28, 7 }
  0x31   : > { %3449 = sst [smem:[#allocation31_spill]] %s2848_s16  ;;  %s2048_s15 = sshll.u32 %s617_s20, 3 }
  0x32   : > { %s3450_s9 = sld [smem:[#allocation34_spill]]  ;;  %s619_s30 = scalar_lea.vmem [#allocation7], %s2048_s15 }
  0x33   : > { %s626_s19 = sshll.u32 %s619_s30, 4  ;;  %p2859_p10 = pnand %p2262_p9, %p2825_p3  ;;  %s2863_s19 = int_to_ptr.vmem [resolvable:$true] %s626_s19 }
  0x34   : > { %p2867_p11 = pnand %p2262_p9, %p2841_p7  ;;  %s689_s12 = sand.u32 1, %s2608_s23  }
  0x35   : > { %p2394_p13 = pneg %p2859_p10 }
  0x38   : > { %s2855_s26 = scalar_lea.hbm %s3450_s9, %s2049_s13  ;;  %s2872_s13 = scalar_lea.sflag [#allocation8], %s615_s29 }
  0x39   : > { %s2392_s15 = scalar_lea.hbm %s2855_s26, 128  ;;  %s2397_s21 = scalar_lea.hbm %s3450_s9, 256 }
  0x3a   : > { %p2393_p12 = scmp.ne.s32.totalorder %s2855_s26, %s2392_s15  ;;  %p2398_p3 = scmp.lt.u32.totalorder %s2855_s26, %s3450_s9 }
  0x3b   : > { %p2399_p4 = scmp.lt.u32.totalorder %s2397_s21, %s2392_s15  ;;  %p2401_p6 = scmp.lt.u32.totalorder %s2392_s15, %s2855_s26 }
  0x3c   : > { %p2395_p0 = pnand %p2394_p13, %p2393_p12 }
  0x3d   : > { %p2400_p5 = por %p2399_p4, %p2398_p3 }
  0x3e   : > { %p2396_p2 = pneg %p2395_p0 }
  0x3f   : > { %p2402_p7 = por %p2401_p6, %p2400_p5 }
  0x41   : > { %p2403_p8 = pnand %p2402_p7, %p2396_p2 }
  0x43   : > { %2406 = shalt.err (!%p2403_p8)
}
  0x44   : > { %s2407_s29 = scalar_lea.vmem %s2863_s19, 128  ;;  %s2642_s30 = smov [#allocation7]  }
  0x45   : > { %p2408_p9 = scmp.ne.s32.totalorder %s2863_s19, %s2407_s29  ;;  %s2412_s0 = sshll.u32 %s2642_s30, 4  ;;  %s2413_s0 = int_to_ptr.vmem [resolvable:$false] %s2412_s0 }
  0x46   : > { %s2414_s17 = scalar_lea.vmem %s2413_s0, 256  ;;  %p2415_p1 = scmp.lt.s32.totalorder %s2863_s19, %s2413_s0 }
  0x47   : > { %p2410_p12 = pnand %p2408_p9, %p2394_p13  ;;  %p2416_p3 = scmp.lt.s32.totalorder %s2414_s17, %s2407_s29 }
  0x49   : > { %p2411_p0 = pneg %p2410_p12  ;;  %p2417_p4 = por %p2416_p3, %p2415_p1 }
  0x4b   : > { %p2418_p5 = pnand %p2417_p4, %p2411_p0 }
  0x4d   : > { %2421 = shalt.err (!%p2418_p5)
}
  0x4e   : > { %2250 = dma.hbm_to_vmem [thread:$0]  (!%p2859_p10), %s2855_s26, 128, %s2863_s19, %s2872_s13  }
  0x4f   : > { %s2902_s15 = sshll.u32 %s689_s12, 4  ;;  %s2117_s21 = sshll.u32 %s2632_s27, 8 }
  0x50   : > { %s3453_s10 = sld [smem:[#allocation42_spill]]  ;;  %s691_s18 = scalar_lea.vmem [#allocation12], %s2902_s15 }
  0x51   : > { %s698_s0 = sshll.u32 %s691_s18, 4  ;;  %p3393_p10 = pneg %p2867_p11  ;;  %s2913_s0 = int_to_ptr.vmem [resolvable:$true] %s698_s0 }
  0x56   : > { %s2910_s30 = scalar_lea.hbm %s3453_s10, %s2117_s21  ;;  %s2427_s17 = scalar_lea.hbm %s3453_s10, 512 }
  0x57   : > { %s2422_s19 = scalar_lea.hbm %s2910_s30, 256  ;;  %p2428_p6 = scmp.lt.u32.totalorder %s2910_s30, %s3453_s10 }
  0x58   : > { %p2423_p1 = scmp.ne.s32.totalorder %s2910_s30, %s2422_s19  ;;  %p2429_p7 = scmp.lt.u32.totalorder %s2427_s17, %s2422_s19 }
  0x59   : > { %p2431_p9 = scmp.lt.u32.totalorder %s2422_s19, %s2910_s30 }
  0x5a   : > { %p2425_p13 = pnand %p3393_p10, %p2423_p1  ;;  %p2430_p8 = por %p2429_p7, %p2428_p6 }
  0x5c   : > { %p2426_p2 = pneg %p2425_p13  ;;  %p2432_p12 = por %p2431_p9, %p2430_p8 }
  0x5e   : > { %p2433_p0 = pnand %p2432_p12, %p2426_p2 }
  0x60   : > { %2436 = shalt.err (!%p2433_p0)
}
  0x61   : > { %s2437_s18 = scalar_lea.vmem %s2913_s0, 256  ;;  %s2643_s26 = smov [#allocation12]  }
  0x62   : > { %p2438_p3 = scmp.ne.s32.totalorder %s2913_s0, %s2437_s18  ;;  %s2442_s12 = sshll.u32 %s2643_s26, 4  ;;  %s2443_s12 = int_to_ptr.vmem [resolvable:$false] %s2442_s12 }
  0x63   : > { %s2444_s20 = scalar_lea.vmem %s2443_s12, 512  ;;  %p2445_p1 = scmp.lt.s32.totalorder %s2913_s0, %s2443_s12 }
  0x64   : > { %p2440_p4 = pnand %p2438_p3, %p3393_p10  ;;  %p2446_p13 = scmp.lt.s32.totalorder %s2444_s20, %s2437_s18 }
  0x66   : > { %p2441_p5 = pneg %p2440_p4  ;;  %p2447_p6 = por %p2446_p13, %p2445_p1 }
  0x68   : > { %p2448_p7 = pnand %p2447_p6, %p2441_p5 }
  0x6a   : > { %2451 = shalt.err (!%p2448_p7)
}
  0x6b   : > { %s3394_s19 = smov 64   ;;  %s3395_s17 = smov 4  }
  0x6c   : > { %2253 = dma.hbm_to_vmem [thread:$0]  (!%p2867_p11), %s2910_s30, 256, %s2913_s0, %s2872_s13, %s3394_s19, %s3394_s19, %s3395_s17  }
  0x6d   : > { %s2945_s29 = sadd.s32 4294967295, %s2640_s4   ;;  %s2044_s18 = sadd.s32 4294967294, %s2640_s4  }
  0x6e   : > { %p69_p2 = scmp.ne.s32.totalorder %s2616_s2, %s2612_s24  ;;  %p3399_p8 = scmp.eq.s32.totalorder %s2945_s29, 0 }
  0x6f   : > { %p324_p9 = scmp.ne.s32.totalorder %s2604_s22, %s2600_s1  ;;  %p572_p12 = scmp.eq.s32.totalorder %s2945_s29, 3 }
  0x70   : > { %p578_p0 = scmp.eq.s32.totalorder %s2044_s18, 3  ;;  %p2956_p3 = por %p3399_p8, %p69_p2 }
  0x71   : > { %p2962_p4 = por %p324_p9, %p3399_p8  ;;  %p3456_p5 = scmp.ne.s32.totalorder %s2620_s25, %s2616_s2 }
  0x72   : > { %s3454_s26 = scalar_select %p2956_p3, 1, 0 }
  0x73   : > { %s3455_s30 = scalar_select %p2962_p4, 1, 0 }
  0x74   : > { %p2969_p1 = por %p572_p12, %p3456_p5  ;;  %p2973_p13 = por %p578_p0, %p69_p2 }
  0x75   : > { %p2045_p6 = scmp.ge.s32.totalorder %s2640_s4, 1  ;;  %p585_p7 = scmp.lt.s32.totalorder %s2640_s4, 5 }
  0x76   : > { %s3457_s0 = scalar_select %p2969_p1, 1, 0 }
  0x77   : > { %s3459_s1 = scalar_select %p2973_p13, 1, 0 }
  0x78   : > { %3458 = sst [smem:[#allocation32_spill]] %s3457_s0  ;;  %p2979_p10 = pnand %p2045_p6, %p585_p7 }
  0x79   : > { %3460 = sst [smem:[#allocation33_spill]] %s3459_s1  ;;  %s2646_s20 = smov [#allocation10]  }
  0x7a   : > { %s3461_s12 = scalar_select %p2979_p10, 1, 0 }
  0x7b   : > { %s598_s18 = sshll.u32 %s2646_s20, 4  ;;  %p2243_p9 = pneg %p2979_p10  ;;  %s2992_s18 = int_to_ptr.vmem [resolvable:$true] %s598_s18 }
  0x7c   : > { %s3462_s14 = sld [smem:[#allocation46_spill]]  ;;  %s730_s10 = scalar_lea.vmem [#allocation13], %s2902_s15 }
  0x7d   : > { %s737_s28 = sshll.u32 %s730_s10, 4  ;;  %p2997_p2 = pnand %p2243_p9, %p3399_p8  ;;  %s3001_s28 = int_to_ptr.vmem [resolvable:$true] %s737_s28 }
  0x7e   : > { %p3464_p0 = pneg %p2867_p11 }
  0x82   : > { %s2990_s9 = scalar_lea.hbm %s3462_s14, %s2117_s21  ;;  %s2457_s17 = scalar_lea.hbm %s3462_s14, 512 }
  0x83   : > { %s2452_s20 = scalar_lea.hbm %s2990_s9, 256  ;;  %p2458_p7 = scmp.lt.u32.totalorder %s2990_s9, %s3462_s14 }
  0x84   : > { %p2453_p12 = scmp.ne.s32.totalorder %s2990_s9, %s2452_s20  ;;  %p2459_p9 = scmp.lt.u32.totalorder %s2457_s17, %s2452_s20 }
  0x85   : > { %p2461_p13 = scmp.lt.u32.totalorder %s2452_s20, %s2990_s9 }
  0x86   : > { %p2455_p5 = pnand %p2453_p12, %p3464_p0  ;;  %p2460_p8 = por %p2459_p9, %p2458_p7 }
  0x88   : > { %p2456_p6 = pneg %p2455_p5  ;;  %p2462_p1 = por %p2461_p13, %p2460_p8 }
  0x8a   : > { %p2463_p4 = pnand %p2462_p1, %p2456_p6 }
  0x8c   : > { %2466 = shalt.err (!%p2463_p4)
}
  0x8d   : > { %s2467_s10 = scalar_lea.vmem %s3001_s28, 256  ;;  %s2647_s21 = smov [#allocation13]  }
  0x8e   : > { %p2468_p12 = scmp.ne.s32.totalorder %s3001_s28, %s2467_s10  ;;  %s2472_s19 = sshll.u32 %s2647_s21, 4  ;;  %s2473_s19 = int_to_ptr.vmem [resolvable:$false] %s2472_s19 }
  0x8f   : > { %s2474_s27 = scalar_lea.vmem %s2473_s19, 512  ;;  %p2475_p10 = scmp.lt.s32.totalorder %s3001_s28, %s2473_s19 }
  0x90   : > { %p2470_p5 = pnand %p2468_p12, %p3464_p0  ;;  %p2476_p7 = scmp.lt.s32.totalorder %s2474_s27, %s2467_s10 }
  0x92   : > { %p2471_p3 = pneg %p2470_p5  ;;  %p2477_p9 = por %p2476_p7, %p2475_p10 }
  0x94   : > { %p2478_p8 = pnand %p2477_p9, %p2471_p3 }
  0x96   : > { %2481 = shalt.err (!%p2478_p8)
}
  0x97   : > { %s3465_s20 = smov 4   ;;  %s3466_s17 = smov 64  }
  0x98   : > { %2256 = dma.hbm_to_vmem [thread:$0]  (!%p2867_p11), %s2990_s9, 256, %s3001_s28, %s2872_s13, %s3466_s17, %s3466_s17, %s3465_s20  }
  0x99   : > { %s3467_s21 = sld [smem:[#allocation35_spill]]  ;;  %p2484_p3 = pneg %p2997_p2 }
  0x9f   : > { %s2482_s25 = scalar_lea.hbm %s3467_s21, 128 }
  0xa0   : > { %p2483_p10 = scmp.ne.s32.totalorder %s3467_s21, %s2482_s25  ;;  %p2489_p13 = scmp.lt.u32.totalorder %s2482_s25, %s3467_s21 }
  0xa2   : > { %p2485_p4 = pnand %p2484_p3, %p2483_p10 }
  0xa4   : > { %p2486_p1 = pneg %p2485_p4 }
  0xa6   : > { %p2491_p6 = pnand %p2489_p13, %p2486_p1 }
  0xa8   : > { %2494 = shalt.err (!%p2491_p6)
}
  0xa9   : > { %s2495_s9 = scalar_lea.vmem %s2992_s18, 128  ;;  %p2503_p5 = scmp.lt.s32.totalorder %s2992_s18, %s2992_s18 }
  0xaa   : > { %p2496_p11 = scmp.ne.s32.totalorder %s2992_s18, %s2495_s9  ;;  %p2504_p7 = scmp.lt.s32.totalorder %s2495_s9, %s2495_s9 }
  0xac   : > { %p2498_p12 = pnand %p2496_p11, %p2484_p3  ;;  %p2505_p9 = por %p2504_p7, %p2503_p5 }
  0xae   : > { %p2499_p0 = pneg %p2498_p12 }
  0xb0   : > { %p2506_p8 = pnand %p2505_p9, %p2499_p0 }
  0xb2   : > { %2509 = shalt.err (!%p2506_p8)
}
  0xb3   : > { %2246 = dma.hbm_to_vmem [thread:$0]  (!%p2997_p2), %s3467_s21, 128, %s2992_s18, [#allocation11]  }
  0xb4   : > { %p3468_p10 = scmp.ne.s32.totalorder %s3461_s12, 0 }
  0xb5   : > { %s771_s25 = sand.u32 (!%p3468_p10), 1, %s2945_s29   ;;  %s3406_s28 = sand.u32 (!%p3468_p10), 1, %s2616_s2  }
  0xb6   : > { %769 = sbr.rel (%p3468_p10) target bundleno = 3084 (0xc0c), region = 100  ;;  %s3057_s13 = sshll.u32 (!%p3468_p10), %s3406_s28, 3 }
  0xb7   : > { %s772_s27 = scalar_lea.sflag (!%p3468_p10), [#allocation8], %s771_s25  ;;  %p3469_p3 = scmp.ne.s32.totalorder (!%p3468_p10), %s3454_s26, 0 }
  0xbd   : > { %2583 = dma.done.wait (%p3469_p3), %s772_s27, 128  }
  0xbe   : > { %2585 = vsyncadd (%p3469_p3), %s772_s27, 4294967168  ;;  %p3470_p2 = scmp.eq.s32.totalorder %s2945_s29, 0 }
  0xc0   : > { %2587 = dma.done.wait (%p3470_p2), [#allocation11], 128   ;;  %p3471_p4 = pmov %p3470_p2 }
  0xc1   : > { %s786_s12 = sand.u32 1, %s2604_s22   ;;  %p3472_p1 = scmp.ne.s32.totalorder %s3455_s30, 0 }
  0xc2   : > { %2589 = vsyncadd (%p3471_p4), [#allocation11], 4294967168  ;;  %s3069_s18 = sshll.u32 %s786_s12, 4 }
  0xc3   : > { %2591 = dma.done.wait (%p3472_p1), %s772_s27, 512  }
  0xc4   : > { %2593 = vsyncadd (%p3472_p1), %s772_s27, 4294966784  ;;  %p914_p13 = scmp.lt.s32.totalorder %s2624_s3, 1  ;;  %s3475_s17 = sld [smem:[#allocation38_spill]] }
  0xc5   : > { %s3476_s6 = sld [smem:[#allocation39_spill]]  ;;  %s3477_s8 = sld [smem:[#allocation40_spill]] }
  0xc6   : > { %s3078_s26 = scalar_select %p914_p13, %s2624_s3, 1 }
  0xc7   : > { %s3478_s27 = sld [smem:[#allocation41_spill]]  ;;  %s3481_s19 = sld [smem:[#allocation45_spill]] }
  0xc8   : > { %s2119_s14 = sshll.u32 %s3078_s26, 4  ;;  %s797_s16 = scalar_lea.vmem [#allocation13], %s3069_s18 }
  0xc9   : > { %p2070_p6 = scmp.ne.s32.totalorder %s2624_s3, 0 }
  0xca   : > { %s3096_s28 = scalar_lea.vmem %s3475_s17, %s2119_s14  ;;  %s3484_s17 = sld [smem:[#allocation49_spill]]  ;;  %v970_v1 = vld [vmem:[#allocation10] sm:$0xff] (!%p2070_p6)  ;;  %vm972_vm0 = vcmask (!%p2070_p6), 261120  }
  0xcb   : > { %s3101_s15 = scalar_lea.vmem %s3476_s6, %s2119_s14  ;;  %s3110_s21 = scalar_lea.vmem %s3477_s8, %s2119_s14 }
  0xcc   : > { %s3480_s6 = sld [smem:[#allocation44_spill]]  ;;  %s3482_s14 = sld [smem:[#allocation47_spill]] }
  0xcd   : > { %s943_s12 = scalar_lea.vmem %s3478_s27, %s3078_s26  ;;  %s952_s11 = scalar_lea.vmem %s3481_s19, %s3078_s26 }
  0xce   : > { %s2122_s8 = sshll.u32 %s3078_s26, 5  ;;  %s3483_s27 = sld [smem:[#allocation48_spill]] }
  0xcf   : > { %968 = sbr.rel (%p2070_p6) target bundleno = 214 (0xd6), region = 120  ;;  %s3485_s4 = scalar_lea.vmem (!%p2070_p6), [#allocation7], %s3057_s13 }
  0xd0   : > { %s963_s1 = scalar_lea.vmem %s3484_s17, %s3078_s26  ;;  %v969_v0 = vld [vmem:[%s3485_s4] sm:$0xff] (!%p2070_p6) }
  0xd1   : > { %v971_v2 = vadd.f32 (!%p2070_p6), %v970_v1, %v969_v0 }
  0xd2   : > { %s949_s24 = scalar_lea.vmem %s3480_s6, %s3078_s26  ;;  %s955_s10 = scalar_lea.vmem %s3482_s14, %s3078_s26 }
  0xd3   : > { %s913_s6 = scalar_lea.vmem [#allocation14], %s3057_s13  ;;  %973 = vst.msk [vmem:[#allocation2] sm:$0xff] (!%p2070_p6), %vm972_vm0, %v971_v2 }
  0xd4   : > { %s3136_s25 = scalar_lea.vmem %s3483_s27, %s2122_s8 }
  0xd6 PF: > { %vm977_vm1 = vcmask 261120   ;;  %v2360_v10 = vld [vmem:[%s3096_s28] sm:$0xff]   ;;  %v2648_v12 = vmov 0.0   ;;  %v2362_v13 = vld [vmem:[%s3096_s28 + $0x8] sm:$0xff]   ;;  %vm2649_vm2 = vmmov 0   ;;  %s3486_s0 = sld [smem:[#allocation36_spill]]  ;;  %s3491_s29 = scalar_lea.vmem %s3373_s7, %s3078_s26  ;;  %v1328_v59 = vlaneseq }
  0xd7   : > { %v2361_v11 = vld [vmem:[%s3101_s15] sm:$0xff]   ;;  %2155 = vmatprep.subr.bf16.mxu0 %v2648_v12  ;;  %2163 = vmatprep.subr.bf16.mxu1 %v2648_v12  ;;  %v2363_v14 = vld [vmem:[%s3101_s15 + $0x8] sm:$0xff]   ;;  %s3488_s30 = sld [smem:[#allocation37_spill]]  ;;  %vm1201_vm3 = vcmask 125952   ;;  %s2650_s22 = smov 112   ;;  %vm1235_vm4 = vcmask 130048  }
  0xd8   : > { %2156 = vmatpush3.bf16.msra.mxu0 %v2360_v10  ;;  %2164 = vmatpush3.bf16.msra.mxu1 %v2361_v11  ;;  %v2364_v24 = vld [vmem:[%s3110_s21] sm:$0xff]   ;;  %v2365_v26 = vld [vmem:[%s3110_s21 + $0x8] sm:$0xff]   ;;  %s3490_s21 = scalar_lea.vmem %s3371_s5, %s3078_s26  ;;  %vm1367_vm5 = vcmask 1043456   ;;  %v1329_v60 = vshrl.u32 %v1328_v59, 7  ;;  %v1331_v61 = vand.u32 127, %v1328_v59  ;;  %vm1337_vm7 = vcmask 64512  }
  0xd9   : > { %2157 = vmatprep.subr.bf16.mxu0 %v2648_v12  ;;  %2165 = vmatprep.subr.bf16.mxu1 %v2648_v12  ;;  %v2073_v27 = vld [vmem:[%s3490_s21] ss:$0 sm:$0xff]  ;;  %vm1466_vm8 = vcmask 257152   ;;  %s3495_s20 = sld [smem:[#allocation43_spill]]  ;;  %vm1680_vm9 = vcmask 523264   ;;  %p2110_p11 = scmp.ne.s32.totalorder %s2624_s3, 1 }
  0xda   : > { %v3147_v3 = vld [vmem:[#allocation2] sm:$0xff]  ;;  %2159 = vmatprep.mubr.msk.bf16.mxu0 %vm2649_vm2, %v2648_v12  ;;  %2167 = vmatprep.mubr.msk.bf16.mxu1 %vm2649_vm2, %v2648_v12  ;;  %vm1332_vm6 = vcmp.gt.s32.totalorder %v1331_v61, %v1329_v60  ;;  %s3501_s3 = sld [smem:[#allocation50_spill]] (!%p2110_p11)  ;;  %s3502_s17 = sld [smem:[#allocation51_spill]] (!%p2110_p11) }
  0xdb   : > { %v978_v4 = vsel %vm977_vm1, %v3147_v3, 0.0  ;;  %v2077_v28 = vld [vmem:[%s3491_s29] ss:$0 sm:$0xff] }
  0xdc   : > { %979 = vadd.xlane.f32.xlu0 %v978_v4  ;;  %2158 = vmatpush3.bf16.msra.mxu0 %v2362_v13  ;;  %s3487_s28 = scalar_lea.vmem %s3486_s0, %s3078_s26  ;;  %v2081_v42 = vld [vmem:[%s943_s12] ss:$0 sm:$0xff]  ;;  %s3493_s12 = scalar_lea.vmem [#allocation12], %s3069_s18 }
  0xdd   : > { %2166 = vmatpush3.bf16.msra.mxu1 %v2363_v14  ;;  %2171 = vmatprep.subr.bf16.mxu0 %v2648_v12  ;;  %v2071_v19 = vld [vmem:[%s3487_s28] ss:$0 sm:$0xff]  ;;  %s3489_s19 = scalar_lea.vmem %s3488_s30, %s3078_s26  ;;  %s3494_s2 = smov %s3493_s12 }
  0xde   : > { %2179 = vmatprep.subr.bf16.mxu1 %v2648_v12  ;;  %v2072_v21 = vld [vmem:[%s3489_s19] ss:$0 sm:$0xff]  ;;  %s2651_s0 = smov 16  }
  0xdf   : > { %s3496_s30 = scalar_lea.vmem %s3495_s20, %s3078_s26  ;;  %v2368_v60 = vld [vmem:[%s797_s16] sm:$0xff]  }
 0x169   : > { %v980_v5 = vpop.xlane.xlu0 %979 }
 0x16a   : > { %v982_v6 = vmul.f32 0.03125, %v980_v5 }
 0x16c   : > { %v983_v7 = vsub.f32 %v3147_v3, %v982_v6 }
 0x16e   : > { %v984_v8 = vmul.f32 %v983_v7, %v983_v7 }
 0x170   : > { %v985_v9 = vsel %vm977_vm1, %v984_v8, 0.0 }
 0x171   : > { %986 = vadd.xlane.f32.xlu0 %v985_v9 }
 0x1fe   : > { %v987_v15 = vpop.xlane.xlu0 %986 }
 0x1ff   : > { %v988_v16 = vmul.f32 0.03125, %v987_v15 }
 0x201   : > { %v989_v17 = vadd.f32 1e-05, %v988_v16 }
 0x203   : > { %2374 = vrsqrt.f32 %v989_v17 }
 0x20d   : > { %v2375_v18 = vpop.eup %2374 }
 0x20e   : > { %v991_v20 = vmul.f32 %v2375_v18, %v983_v7 }
 0x210   : > { %v998_v22 = vmul.f32 %v2071_v19, %v991_v20 }
 0x212   : > { %v1005_v23 = vadd.f32 %v2072_v21, %v998_v22 }
 0x214   : > { %v1006_v25 = vpack.c.bf16 %v1005_v23, %v1005_v23 }
 0x216   : > { %2160 = vmatmul.mubr.msk.bf16.vlgmr.msra.gmra.mrb[0].mxu0 %vm977_vm1, %v1006_v25  ;;  %2168 = vmatmul.mubr.msk.bf16.vlgmr.msra.gmra.mrb[0].mxu1 %vm977_vm1, %v1006_v25 }
 0x217   : > { %2172 = vmatpush3.bf16.msra.mxu0 %v2364_v24  ;;  %2175 = vmatprep.mubr.msk.bf16.mxu0 %vm2649_vm2, %v2648_v12 }
 0x218   : > { %2173 = vmatprep.subr.bf16.mxu0 %v2648_v12  ;;  %2181 = vmatprep.mubr.msk.bf16.mxu1 %vm2649_vm2, %v2648_v12 }
 0x21b   : > { %2174 = vmatpush3.bf16.msra.mxu0 %v2365_v26 }
 0x21c   : > { %2185 = vmatprep.subr.bf16.mxu0 %v2648_v12 }
 0x21e   : > { %2176 = vmatmul.mubr.msk.bf16.vlgmr.msra.gmra.mrb[4].mxu0 %vm977_vm1, %v1006_v25 }
 0x21f   : > { %2187 = vmatprep.mubr.msk.bf16.mxu0 %vm2649_vm2, %v2648_v12 }
 0x2e9   : > { %v1067_v29 = vpop.f32.mrb[0].mxu0  ;;  %v1131_v30 = vpop.f32.mrb[0].mxu1 }
 0x2ea   : > { %v1068_v31 = vadd.f32 %v2073_v27, %v1067_v29  ;;  %v1132_v32 = vadd.f32 %v2077_v28, %v1131_v30  ;;  %v2161_v33 = vpop.f32.mrb[1].mxu0  ;;  %v2169_v34 = vpop.f32.mrb[1].mxu1 }
 0x2eb   : > { %v1070_v35 = vpop.f32.mrb[2].mxu0  ;;  %v1134_v36 = vpop.f32.mrb[2].mxu1  ;;  %v2366_v33 = vld [vmem:[%s3493_s12] sm:$0xff]  }
 0x2ec   : > { %v1073_v37 = vmul.f32 0.25, %v1068_v31  ;;  %v1203_v38 = vpack.c.bf16 %v1132_v32, %v1132_v32  ;;  %v2162_v39 = vpop.f32.mrb[3].mxu0  ;;  %v2170_v40 = vpop.f32.mrb[3].mxu1  ;;  %v2367_v34 = vld [vmem:[%s3494_s2 + $0x8] sm:$0xff]  }
 0x2ee   : > { %v1200_v41 = vpack.c.bf16 %v1073_v37, %v1073_v37  ;;  %1204 = vst.msk [vmem:[#allocation4] sm:$0xf] %vm1201_vm3, %v1203_v38  ;;  %1218 = vrot.lane.b32.xlu1 %v1203_v38, %s2650_s22 }
 0x2f0   : > { %1202 = vst.msk [vmem:[#allocation3] sm:$0xf] %vm1201_vm3, %v1200_v41 }
 0x2f1   : > { %v1194_v43 = vpop.f32.mrb[4].mxu0 }
 0x2f2   : > { %v1195_v44 = vadd.f32 %v2081_v42, %v1194_v43  ;;  %1210 = vrot.lane.b32.xlu1 %v1200_v41, %s2650_s22  ;;  %v2177_v45 = vpop.f32.mrb[5].mxu0 }
 0x2f3   : > { %v1197_v46 = vpop.f32.mrb[6].mxu0 }
 0x2f4   : > { %v1205_v47 = vpack.c.bf16 %v1195_v44, %v1195_v44  ;;  %v2178_v48 = vpop.f32.mrb[7].mxu0 }
 0x2f5   : > { %v1233_v49 = vld [vmem:[#allocation4] sm:$0xf] }
 0x2f6   : > { %1206 = vst.msk [vmem:[#allocation5] sm:$0xf] %vm1201_vm3, %v1205_v47  ;;  %v1240_v50 = vsel %vm1235_vm4, %v1233_v49, 0 }
 0x2f7   : > { %2180 = vmatpush3.bf16.xpose.msra.mxu1 %v1240_v50  ;;  %v1231_v51 = vld [vmem:[#allocation3] sm:$0xf] }
 0x2f8   : > { %2191 = vmatprep.subr.bf16.mxu1 %v2648_v12 }
 0x2fd   : > { %v1362_v52 = vld [vmem:[#allocation5] sm:$0xf] }
 0x2fe   : > { %2182 = vmatmul.mubr.msk.bf16.vlgmr.msra.gmra.mrb[4].mxu1 %vm1235_vm4, %v1231_v51  ;;  %v1369_v53 = vsel %vm1367_vm5, %v1362_v52, 0 }
 0x2ff   : > { %2192 = vmatpush3.bf16.msra.mxu1 %v1369_v53  ;;  %2193 = vmatprep.mubr.msk.bf16.mxu1 %vm2649_vm2, %v2648_v12 }
 0x300   : > { %2203 = vmatprep.subr.bf16.mxu1 %v2648_v12 }
 0x360   : > { %v1219_v54 = vpop.permute.xlu1 %1218 }
 0x361   : > { %1222 = vst.msk [vmem:[#allocation4 + $0x4] sm:$0xf] %vm1201_vm3, %v1219_v54 }
 0x364   : > { %v1211_v55 = vpop.permute.xlu1 %1210 }
 0x365   : > { %1214 = vst.msk [vmem:[#allocation3 + $0x4] sm:$0xf] %vm1201_vm3, %v1211_v55 }
 0x368   : > { %v1234_v56 = vld [vmem:[#allocation4 + $0x4] sm:$0xf] }
 0x369   : > { %v1286_v57 = vsel %vm1235_vm4, %v1234_v56, 0 }
 0x36a   : > { %2186 = vmatpush3.bf16.xpose.msra.mxu0 %v1286_v57 }
 0x36b   : > { %2197 = vmatprep.subr.bf16.mxu0 %v2648_v12 }
 0x36c   : > { %v1232_v58 = vld [vmem:[#allocation3 + $0x4] sm:$0xf] }
 0x371   : > { %2188 = vmatmul.mubr.msk.bf16.vlgmr.msra.gmra.mrb[8].mxu0 %vm1235_vm4, %v1232_v58 }
 0x372   : > { %2199 = vmatprep.mubr.msk.bf16.mxu0 %vm2649_vm2, %v2648_v12 }
 0x3d1   : > { %v1276_v62 = vpop.f32.mrb[4].mxu1 }
 0x3d2   : > { %v1335_v63 = vsel %vm1332_vm6, -3.4028235e+38, %v1276_v62  ;;  %v2183_v0 = vpop.f32.mrb[5].mxu1 }
 0x3d3   : > { %v1279_v1 = vpop.f32.mrb[6].mxu1  ;;  %v1338_v2 = vsel %vm1337_vm7, %v1335_v63, -inf }
 0x3d4   : > { %1339 = vmax.xlane.f32.xlu1 %v1338_v2  ;;  %v2184_v4 = vpop.f32.mrb[7].mxu1  ;;  %v2097_v1 = vld [vmem:[%s949_s24] ss:$0 sm:$0xff] }
 0x3d5   : > { %v2098_v4 = vld [vmem:[%s952_s11] ss:$0 sm:$0xff] }
 0x444   : > { %v1322_v5 = vpop.f32.mrb[8].mxu0 }
 0x445   : > { %v1336_v6 = vsel %vm1332_vm6, -3.4028235e+38, %v1322_v5  ;;  %v2189_v7 = vpop.f32.mrb[9].mxu0 }
 0x446   : > { %v1325_v8 = vpop.f32.mrb[10].mxu0  ;;  %v1341_v9 = vsel %vm1337_vm7, %v1336_v6, -inf }
 0x447   : > { %1342 = vmax.xlane.f32.xlu0 %v1341_v9  ;;  %v2190_v10 = vpop.f32.mrb[11].mxu0  ;;  %v2370_v8 = vld [vmem:[%s3136_s25] sm:$0xff]   ;;  %v2371_v9 = vld [vmem:[%s3136_s25 + $0x8] sm:$0xff]  }
 0x448   : > { %v2372_v10 = vld [vmem:[%s3136_s25 + $0x10] sm:$0xff]  }
 0x461   : > { %v1340_v17 = vpop.xlane.xlu1 %1339 }
 0x462   : > { %v1344_v18 = vsub.f32 %v1335_v63, %v1340_v17 }
 0x464   : > { %v1346_v19 = vmul.f32 1.442695, %v1344_v18 }
 0x4d4   : > { %v1343_v11 = vpop.xlane.xlu0 %1342 }
 0x4d5   : > { %v1345_v13 = vsub.f32 %v1336_v6, %v1343_v11  ;;  %v2373_v11 = vld [vmem:[%s3136_s25 + $0x18] sm:$0xff]  }
 0x4d7   : > { %v1348_v14 = vmul.f32 1.442695, %v1345_v13  ;;  %v2099_v13 = vld [vmem:[%s955_s10] ss:$0 sm:$0xff] }
 0x4d9   : > { %2376 = vpow2.f32 %v1348_v14 }
 0x4da   : > { %2378 = vpow2.f32 %v1346_v19 }
 0x4e3   : > { %v2377_v15 = vpop.eup %2376 }
 0x4e4   : > { %v1353_v16 = vsel %vm1337_vm7, %v2377_v15, 0.0  ;;  %v2379_v20 = vpop.eup %2378 }
 0x4e5   : > { %1354 = vadd.xlane.f32.xlu0 %v1353_v16  ;;  %v1350_v21 = vsel %vm1337_vm7, %v2379_v20, 0.0 }
 0x4fb   : > { %1226 = vrot.lane.b32.xlu0 %v1205_v47, %s2650_s22  ;;  %v2093_v47 = vld [vmem:[%s3496_s30] ss:$0 sm:$0xff] }
 0x51a   : > { %1351 = vadd.xlane.f32.xlu0 %v1350_v21 }
 0x572   : > { %v1355_v22 = vpop.xlane.xlu0 %1354 }
 0x573   : > { %2380 = vrcp.f32 %v1355_v22 }
 0x576   : > { %v1227_v23 = vpop.permute.xlu0 %1226 }
 0x577   : > { %1230 = vst.msk [vmem:[#allocation5 + $0x4] sm:$0xf] %vm1201_vm3, %v1227_v23 }
 0x57d   : > { %v2381_v24 = vpop.eup %2380 }
 0x57e   : > { %v1359_v25 = vmul.f32 %v2381_v24, %v2377_v15  ;;  %v1363_v26 = vld [vmem:[#allocation5 + $0x4] sm:$0xf] }
 0x57f   : > { %v1415_v27 = vsel %vm1367_vm5, %v1363_v26, 0 }
 0x580   : > { %2198 = vmatpush3.bf16.msra.mxu0 %v1415_v27  ;;  %v1361_v28 = vpack.c.bf16 %v1359_v25, %v1359_v25  ;;  %v2104_v25 = vld [vmem:[%s963_s1] ss:$0 sm:$0xff] }
 0x581   : > { %2211 = vmatprep.subr.bf16.mxu0 %v2648_v12 }
 0x583   : > { %2200 = vmatmul.mubr.msk.bf16.vlgmr.msra.gmra.mrb[12].mxu0 %vm1337_vm7, %v1361_v28 }
 0x584   : > { %2215 = vmatprep.mubr.msk.bf16.mxu0 %vm2649_vm2, %v2648_v12  ;;  %2212 = vmatpush3.bf16.msra.mxu0 %v2368_v60 }
 0x585   : > { %2213 = vmatprep.subr.bf16.mxu0 %v2648_v12 }
 0x5a7   : > { %v1352_v29 = vpop.xlane.xlu0 %1351 }
 0x5a8   : > { %2382 = vrcp.f32 %v1352_v29 }
 0x5b2   : > { %v2383_v30 = vpop.eup %2382 }
 0x5b3   : > { %v1358_v31 = vmul.f32 %v2383_v30, %v2379_v20 }
 0x5b5   : > { %v1360_v32 = vpack.c.bf16 %v1358_v31, %v1358_v31 }
 0x5b7   : > { %2194 = vmatmul.mubr.msk.bf16.vlgmr.msra.gmra.mrb[8].mxu1 %vm1337_vm7, %v1360_v32 }
 0x5b8   : > { %2207 = vmatprep.mubr.msk.bf16.mxu1 %vm2649_vm2, %v2648_v12  ;;  %2204 = vmatpush3.bf16.msra.mxu1 %v2366_v33 }
 0x5b9   : > { %2205 = vmatprep.subr.bf16.mxu1 %v2648_v12 }
 0x5bc   : > { %2206 = vmatpush3.bf16.msra.mxu1 %v2367_v34 }
 0x5bd   : > { %2219 = vmatprep.subr.bf16.mxu1 %v2648_v12 }
 0x656   : > { %v1451_v35 = vpop.f32.mrb[12].mxu0 }
 0x657   : > { %v2126_v36 = vpack.c.bf16 %v1451_v35, %v1451_v35  ;;  %v2201_v37 = vpop.f32.mrb[13].mxu0 }
 0x658   : > { %v1454_v38 = vpop.f32.mrb[14].mxu0 }
 0x659   : > { %1463 = vrot.lane.b32.xlu1 %v2126_v36, %s2651_s0  ;;  %v2202_v39 = vpop.f32.mrb[15].mxu0 }
 0x68a   : > { %v1405_v40 = vpop.f32.mrb[8].mxu1 }
 0x68b   : > { %v1457_v41 = vpack.c.bf16 %v1405_v40, %v1405_v40  ;;  %v2195_v42 = vpop.f32.mrb[9].mxu1 }
 0x68c   : > { %v1408_v43 = vpop.f32.mrb[10].mxu1  ;;  %v2111_v42 = vld [vmem:[%s3501_s3] ss:$0 sm:$0xff] (!%p2110_p11) }
 0x68d   : > { %1458 = vst.msk [vmem:[#allocation6] sm:$0xf] %vm1201_vm3, %v1457_v41  ;;  %v2196_v44 = vpop.f32.mrb[11].mxu1 }
 0x68e   : > { %v2112_v44 = vld [vmem:[%s3502_s17] ss:$0 sm:$0xff] (!%p2110_p11) }
 0x6cb   : > { %v1464_v45 = vpop.permute.xlu1 %1463 }
 0x6cc   : > { %1467 = vst.msk [vmem:[#allocation6] sm:$0xf] %vm1466_vm8, %v1464_v45 }
 0x6d3   : > { %v1468_v46 = vld [vmem:[#allocation6] sm:$0xf] }
 0x6d4   : > { %2208 = vmatmul.mubr.msk.bf16.vlgmr.msra.gmra.mrb[12].mxu1 %vm977_vm1, %v1468_v46 }
 0x6d5   : > { %2227 = vmatprep.mubr.msk.bf16.mxu1 %vm2649_vm2, %v2648_v12  ;;  %2220 = vmatpush3.bf16.msra.mxu1 %v2370_v8 }
 0x6d6   : > { %2221 = vmatprep.subr.bf16.mxu1 %v2648_v12 }
 0x6d9   : > { %2222 = vmatpush3.bf16.msra.mxu1 %v2371_v9 }
 0x6da   : > { %2223 = vmatprep.subr.bf16.mxu1 %v2648_v12 }
 0x6dd   : > { %2224 = vmatpush3.bf16.msra.mxu1 %v2372_v10 }
 0x6de   : > { %2225 = vmatprep.subr.bf16.mxu1 %v2648_v12 }
 0x6e1   : > { %2226 = vmatpush3.bf16.msra.mxu1 %v2373_v11 }
 0x7a7   : > { %v1529_v48 = vpop.f32.mrb[12].mxu1 }
 0x7a8   : > { %v1530_v49 = vadd.f32 %v2093_v47, %v1529_v48  ;;  %v2209_v50 = vpop.f32.mrb[13].mxu1 }
 0x7a9   : > { %v1532_v51 = vpop.f32.mrb[14].mxu1 }
 0x7aa   : > { %v1535_v52 = vadd.f32 %v1530_v49, %v3147_v3  ;;  %v2210_v53 = vpop.f32.mrb[15].mxu1  ;;  %v2369_v3 = vld [vmem:[%s797_s16 + $0x8] sm:$0xff]  }
 0x7ab   : > { %2214 = vmatpush3.bf16.msra.mxu0 %v2369_v3 }
 0x7ac   : > { %v1538_v54 = vsel %vm977_vm1, %v1535_v52, 0.0 }
 0x7ad   : > { %1539 = vadd.xlane.f32.xlu1 %v1538_v54 }
 0x83a   : > { %v1540_v55 = vpop.xlane.xlu1 %1539 }
 0x83b   : > { %v1541_v56 = vmul.f32 0.03125, %v1540_v55 }
 0x83d   : > { %v1542_v57 = vsub.f32 %v1535_v52, %v1541_v56 }
 0x83f   : > { %v1543_v58 = vmul.f32 %v1542_v57, %v1542_v57 }
 0x841   : > { %v1544_v59 = vsel %vm977_vm1, %v1543_v58, 0.0 }
 0x842   : > { %1545 = vadd.xlane.f32.xlu0 %v1544_v59 }
 0x8cf   : > { %v1546_v61 = vpop.xlane.xlu0 %1545 }
 0x8d0   : > { %v1547_v62 = vmul.f32 0.03125, %v1546_v61 }
 0x8d2   : > { %v1548_v63 = vadd.f32 1e-05, %v1547_v62 }
 0x8d4   : > { %2384 = vrsqrt.f32 %v1548_v63 }
 0x8de   : > { %v2385_v0 = vpop.eup %2384 }
 0x8df   : > { %v1550_v2 = vmul.f32 %v2385_v0, %v1542_v57 }
 0x8e1   : > { %v1557_v5 = vmul.f32 %v2097_v1, %v1550_v2 }
 0x8e3   : > { %v1564_v6 = vadd.f32 %v2098_v4, %v1557_v5 }
 0x8e5   : > { %v1565_v7 = vpack.c.bf16 %v1564_v6, %v1564_v6 }
 0x8e7   : > { %2216 = vmatmul.mubr.msk.bf16.vlgmr.msra.gmra.mrb[16].mxu0 %vm977_vm1, %v1565_v7 }
 0x9ba   : > { %v1626_v14 = vpop.f32.mrb[16].mxu0 }
 0x9bb   : > { %v1627_v15 = vadd.f32 %v2099_v13, %v1626_v14  ;;  %v2217_v16 = vpop.f32.mrb[17].mxu0 }
 0x9bc   : > { %v1629_v17 = vpop.f32.mrb[18].mxu0 }
 0x9bd   : > { %v2103_v18 = vmul.f32 -1.702, %v1627_v15  ;;  %v2218_v19 = vpop.f32.mrb[19].mxu0 }
 0x9bf   : > { %v1634_v20 = vmul.f32 1.442695, %v2103_v18 }
 0x9c1   : > { %2386 = vpow2.f32 %v1634_v20 }
 0x9cb   : > { %v2387_v21 = vpop.eup %2386 }
 0x9cc   : > { %v1636_v22 = vadd.f32 1.0, %v2387_v21 }
 0x9ce   : > { %2388 = vrcp.f32 %v1636_v22 }
 0x9d8   : > { %v2389_v12 = vpop.eup %2388 }
 0x9d9   : > { %v1639_v23 = vmul.f32 %v2389_v12, %v1627_v15 }
 0x9db   : > { %v1640_v24 = vpack.c.bf16 %v1639_v23, %v1639_v23 }
 0x9dd   : > { %2228 = vmatmul.mubr.msk.bf16.vlgmr.msra.gmra.mrb[16].mxu1 %vm1680_vm9, %v1640_v24 }
 0xaaf   : > { %1729 = sbr.rel (%p2110_p11) target bundleno = 3055 (0xbef), region = 124 }
 0xab0   : > { %v1718_v26 = vpop.f32.mrb[16].mxu1 }
 0xab1   : > { %v1719_v27 = vadd.f32 %v2104_v25, %v1718_v26  ;;  %v2229_v28 = vpop.f32.mrb[17].mxu1 }
 0xab2   : > { %v1721_v29 = vpop.f32.mrb[18].mxu1 }
 0xab3   : > { %v1724_v30 = vadd.f32 %v1719_v27, %v1535_v52  ;;  %v2230_v31 = vpop.f32.mrb[19].mxu1 }
 0xab5   : > { %1725 = vst.msk [vmem:[#allocation2] sm:$0xff] %vm977_vm1, %v1724_v30  ;;  %v1732_v32 = vsel (!%p2110_p11), %vm977_vm1, %v1724_v30, 0.0 }
 0xab6   : > { %1733 = vadd.xlane.f32.xlu0 %v1732_v32 }
 0xb43   : > { %v1734_v33 = vpop.xlane.xlu0 %1733 }
 0xb44   : > { %v1735_v34 = vmul.f32 0.03125, %v1734_v33 }
 0xb46   : > { %v1736_v35 = vsub.f32 %v1724_v30, %v1735_v34 }
 0xb48   : > { %v1737_v36 = vmul.f32 %v1736_v35, %v1736_v35 }
 0xb4a   : > { %v1738_v37 = vsel %vm977_vm1, %v1737_v36, 0.0 }
 0xb4b   : > { %1739 = vadd.xlane.f32.xlu0 %v1738_v37 }
 0xbd8   : > { %v1740_v38 = vpop.xlane.xlu0 %1739 }
 0xbd9   : > { %v1741_v39 = vmul.f32 0.03125, %v1740_v38 }
 0xbdb   : > { %v1742_v40 = vadd.f32 1e-05, %v1741_v39 }
 0xbdd   : > { %2390 = vrsqrt.f32 %v1742_v40 }
 0xbe7   : > { %v2391_v41 = vpop.eup %2390 }
 0xbe8   : > { %v1744_v43 = vmul.f32 %v2391_v41, %v1736_v35 }
 0xbea   : > { %v1751_v45 = vmul.f32 %v2111_v42, %v1744_v43 }
 0xbec   : > { %v1758_v46 = vadd.f32 %v2112_v44, %v1751_v45 }
 0xbee   : > { %1759 = vst.msk [vmem:[%s913_s6] sm:$0xff] %vm977_vm1, %v1758_v46 }
 0xbef PF: > { %s3503_s4 = sld [smem:[#allocation24_spill]]  ;;  %s3504_s8 = sld [smem:[#allocation22_spill]] }
 0xbf0   : > { %s3505_s12 = sld [smem:[#allocation32_spill]]  ;;  %s3506_s15 = sld [smem:[#allocation52_spill]] }
 0xbf1   : > { %s1774_s30 = sshll.u32 %s913_s6, 4  ;;  %s2652_s21 = smov [#allocation14]   ;;  %s1775_s30 = int_to_ptr.vmem [resolvable:$true] %s1774_s30 }
 0xbf2   : > { %s2510_s14 = scalar_lea.vmem %s1775_s30, 128  ;;  %s2514_s23 = sshll.u32 %s2652_s21, 4  ;;  %s2515_s23 = int_to_ptr.vmem [resolvable:$false] %s2514_s23 }
 0xbf3   : > { %p2511_p12 = scmp.ne.s32.totalorder %s1775_s30, %s2510_s14  ;;  %s2516_s27 = scalar_lea.vmem %s2515_s23, 256 }
 0xbf4   : > { %p2517_p9 = scmp.lt.s32.totalorder %s1775_s30, %s2515_s23  ;;  %p2518_p8 = scmp.lt.s32.totalorder %s2516_s27, %s2510_s14 }
 0xbf5   : > { %s2114_s2 = sshll.u32 %s3503_s4, 7  ;;  %s3507_s19 = sand.u32 1, %s3504_s8  }
 0xbf6   : > { %s3306_s20 = scalar_lea.hbm %s3506_s15, %s2114_s2  ;;  %s1761_s9 = scalar_lea.sflag [#allocation9], %s3507_s19 }
 0xbf7   : > { %p3508_p0 = scmp.ne.s32.totalorder %s3505_s12, 0  ;;  %p2519_p10 = por %p2518_p8, %p2517_p9 }
 0xbf9   : > { %p2512_p5 = pnand %p2511_p12, %p3508_p0 }
 0xbfb   : > { %p2513_p7 = pneg %p2512_p5 }
 0xbfd   : > { %p2520_p3 = pnand %p2519_p10, %p2513_p7 }
 0xbff   : > { %2523 = shalt.err (!%p2520_p3)
}
 0xc00   : > { %s2524_s13 = scalar_lea.hbm %s3306_s20, 128  ;;  %s2528_s18 = scalar_lea.hbm %s3506_s15, 256 }
 0xc01   : > { %p2525_p2 = scmp.ne.s32.totalorder %s3306_s20, %s2524_s13  ;;  %p2529_p13 = scmp.lt.u32.totalorder %s3306_s20, %s3506_s15 }
 0xc02   : > { %p2530_p6 = scmp.lt.u32.totalorder %s2528_s18, %s2524_s13  ;;  %p2532_p12 = scmp.lt.u32.totalorder %s2524_s13, %s3306_s20 }
 0xc03   : > { %p2526_p4 = pnand %p2525_p2, %p3508_p0 }
 0xc04   : > { %p2531_p11 = por %p2530_p6, %p2529_p13 }
 0xc05   : > { %p2527_p1 = pneg %p2526_p4 }
 0xc06   : > { %p2533_p5 = por %p2532_p12, %p2531_p11 }
 0xc08   : > { %p2534_p7 = pnand %p2533_p5, %p2527_p1 }
 0xc0a   : > { %2537 = shalt.err (!%p2534_p7)
}
 0xc0b   : > { %2241 = dma.vmem_to_hbm [thread:$0]  (%p3508_p0), %s1775_s30, 128, %s3306_s20, %s1761_s9  }
 0xc0c PF: > { %s3509_s16 = sld [smem:[#allocation27_spill]]  ;;  %s3510_s10 = sld [smem:[#allocation21_spill]] }
 0xc0d   : > { %s3511_s1 = sld [smem:[#allocation33_spill]] }
 0xc12   : > { %p2264_p9 = scmp.ge.s32.totalorder %s3509_s16, 2  ;;  %s1786_s26 = sand.u32 1, %s3510_s10  }
 0xc13   : > { %p3512_p8 = scmp.ne.s32.totalorder %s3511_s1, 0  ;;  %s1787_s3 = scalar_lea.sflag [#allocation9], %s1786_s26 }
 0xc15   : > { %p2258_p10 = pnand %p2264_p9, %p3512_p8 }
 0xc17   : > { %2595 = dma.done.wait (!%p2258_p10), %s1787_s3, 128  }
 0xc18   : > { %2597 = vsyncadd (!%p2258_p10), %s1787_s3, 4294967168  ;;  %s37_s4 = sadd.s32 1, %s3509_s16   ;;  %s3513_s1 = sld [smem:[#allocation19_spill]] }
 0xc19   : > { %p34_p3 = scmp.ge.s32.totalorder %s37_s4, 6   ;;  %s3514_s22 = sld [smem:[#allocation20_spill]] }
 0xc1a   : > { %s3515_s23 = sld [smem:[#allocation30_spill]]  ;;  %s3516_s24 = sld [smem:[#allocation22_spill]] }
 0xc1b   : > { %s3517_s2 = sld [smem:[#allocation23_spill]]  ;;  %s3518_s25 = sld [smem:[#allocation31_spill]] }
 0xc1c   : > { %s3519_s3 = sld [smem:[#allocation25_spill]]  ;;  %s3520_s26 = sld [smem:[#allocation26_spill]] }
 0xc1d   : > { %s3521_s27 = sld [smem:[#allocation28_spill]]  ;;  %s3522_s28 = sld [smem:[#allocation29_spill]] }
 0xc1e   :  { %36 = sbr.rel (!%p34_p3) target bundleno = 30 (0x1e), region = 224 }
 0xc25   :  { %1792 = vsyncpa [#allocation8], 1 }
 0xc26   :  { %1794 = vsyncpa [#allocation8 + $0x1], 1 }
 0xc27   :  { %1795 = vsyncpa [#allocation11], 1 }
 0xc28   :  { %1796 = vsyncpa [#allocation9], 1 }
 0xc29   :  { %1798 = vsyncpa [#allocation9 + $0x1], 1 }

</bundles_post_ra>
